<compile_context>
chip_gen: v6e
topology: v6e:2x2x1
jax: 0.10.0
libtpu: 0.0.40
codegen_flags: <defaults>
</compile_context>

<pallas_src>
import functools
import math

import jax
import jax.numpy as jnp
from jax.experimental import pallas as pl
from jax.experimental.pallas import tpu as pltpu


def _round_up(v, m):
    return (v + m - 1) // m * m


def encoder_block_kernel(num_heads, e_true, nq, tq, compute_dtype,
                         x_ref,
                         g1_ref, be1_ref,
                         wqkv_ref, wp_ref,
                         g2_ref, be2_ref,
                         w1_ref, b1_ref, w2_ref, b2_ref,
                         o_ref):
    """One grid step = (one batch element) x (one Tq-row query tile).

    Padded, lane-dense shapes:
      x_ref: (S, Ep)   o_ref: (Tq, Ep)
      wqkv: (Ep, 3*Ep)  wp: (Ep, Ep)  w1: (Ep, Hp)  b1: (1, Hp)  w2: (Hp, Ep)  b2: (1, Ep)
      g1/be1/g2/be2: (1, Ep)
    """
    f32 = jnp.float32
    x = x_ref[...]
    S, Ep = x.shape
    H = num_heads
    Dp = Ep // H
    inv_e = 1.0 / float(e_true)      # LayerNorm stats over the TRUE feature count
    eps = 1e-5

    def ln(v, g_ref, b_ref):
        # Sum-based stats: zero-padded columns contribute nothing to sum / sum-of-squares.
        mean = jnp.sum(v, axis=-1, keepdims=True) * inv_e
        var = jnp.sum(v * v, axis=-1, keepdims=True) * inv_e - mean * mean
        return (v - mean) * jax.lax.rsqrt(var + eps) * g_ref[...] + b_ref[...]

    def cast(a):                      # matmul-operand dtype (bf16 on v6e/v7x), f32 acc
        return a.astype(compute_dtype)

    # ---------------- LayerNorm 1 over the full sequence (K/V need every row) ----------
    xn = ln(x, g1_ref, be1_ref)

    # ---------------- Fused QKV projection: a single (S, 3*Ep) MXU matmul ---------------
    # The 1/sqrt(emb_size) softmax scale is already folded into the Q columns of wqkv.
    qkv = jnp.dot(cast(xn), wqkv_ref[...], preferred_element_type=f32)
    q_all = qkv[:, 0:Ep]
    k = qkv[:, Ep:2 * Ep]
    v = qkv[:, 2 * Ep:3 * Ep]

    if nq == 1:                       # common case (and the demo): q tile == full sequence
        q = q_all
        x_t = x
    else:                             # row-tiled queries: slice this step's Tq rows
        r0 = pl.multiple_of(pl.program_id(1) * tq, tq)
        q = jax.lax.dynamic_slice_in_dim(q_all, r0, tq, axis=0)
        x_t = jax.lax.dynamic_slice_in_dim(x, r0, tq, axis=0)

    # ---------------- Head-major attention: batched (H,Tq,Dp)x(H,S,Dp) einsums ----------
    qh = jnp.swapaxes(q.reshape(tq, H, Dp), 0, 1)      # (H, Tq, Dp)
    kh = jnp.swapaxes(k.reshape(S, H, Dp), 0, 1)       # (H, S, Dp)
    vh = jnp.swapaxes(v.reshape(S, H, Dp), 0, 1)       # (H, S, Dp)
    energy = jnp.einsum("hqd,hkd->hqk", cast(qh), cast(kh),
                        preferred_element_type=f32)    # (H, Tq, S)
    m = jnp.max(energy, axis=-1, keepdims=True)
    p = jnp.exp(energy - m)
    # Per-row reciprocal (EUP slot) + broadcast multiply instead of an (H,Tq,S) divide.
    att = p * pl.reciprocal(jnp.sum(p, axis=-1, keepdims=True))
    oh = jnp.einsum("hqk,hkd->hqd", cast(att), cast(vh),
                    preferred_element_type=f32)        # (H, Tq, Dp)
    o2 = jnp.swapaxes(oh, 0, 1).reshape(tq, Ep)        # head-concat layout

    # ---------------- Single output-projection matmul + residual 1 ----------------------
    y = jnp.dot(cast(o2), wp_ref[...], preferred_element_type=f32) + x_t

    # ---------------- LayerNorm 2 + FeedForward (exact-erf GELU) + residual 2 -----------
    yn = ln(y, g2_ref, be2_ref)
    hdn = jnp.dot(cast(yn), w1_ref[...], preferred_element_type=f32) + b1_ref[...]
    hdn = 0.5 * hdn * (1.0 + jax.lax.erf(hdn * (1.0 / math.sqrt(2.0))))
    ffn = jnp.dot(cast(hdn), w2_ref[...], preferred_element_type=f32) + b2_ref[...]

    o_ref[...] = (ffn + y).astype(o_ref.dtype)


def _build_padded_params(params, num_heads, emb, hidden, compute_dtype):
    """Zero-pad weights to lane-dense (multiple-of-128) shapes.

    Q/K/V output columns and the W_proj input rows are padded PER HEAD
    (real index h*D + d -> padded index h*Dp + d) so that an in-kernel reshape
    (rows, Ep) -> (rows, H, Dp) splits heads correctly.  Everything else is
    end-padded with zeros (including LN gammas, so padded columns stay exactly 0).
    """
    E, H, Hf = emb, num_heads, hidden
    D = E // H
    Ep = _round_up(E, 128)
    assert Ep % H == 0, "padded embedding size must stay divisible by num_heads"
    Dp = Ep // H
    Hp = _round_up(Hf, 128)

    def head_cols(w):                       # (E_in, E_out) -> (Ep, Ep)
        w3 = w.reshape(E, H, D)
        w3 = jnp.pad(w3, ((0, Ep - E), (0, 0), (0, Dp - D)))
        return w3.reshape(Ep, Ep)

    scale = 1.0 / math.sqrt(float(E))       # torch: softmax(energy / emb_size**0.5)
    wq = head_cols(params["wq"] * scale)    # fold softmax scale into Q columns (free)
    wk = head_cols(params["wk"])
    wv = head_cols(params["wv"])
    wqkv = jnp.concatenate([wq, wk, wv], axis=1)        # fused QKV weight (Ep, 3*Ep)

    wp3 = params["wp"].reshape(H, D, E)                 # rows are the head-concat axis
    wp3 = jnp.pad(wp3, ((0, 0), (0, Dp - D), (0, Ep - E)))
    wp = wp3.reshape(Ep, Ep)

    w1 = jnp.pad(params["w1"], ((0, Ep - E), (0, Hp - Hf)))
    w2 = jnp.pad(params["w2"], ((0, Hp - Hf), (0, Ep - E)))

    def vec(v, n):                          # pad row vectors with ZEROS (gammas too!)
        return jnp.pad(v, ((0, 0), (0, n - v.shape[1])))

    padded = dict(
        g1=vec(params["g1"], Ep), be1=vec(params["be1"], Ep),
        wqkv=wqkv.astype(compute_dtype), wp=wp.astype(compute_dtype),
        g2=vec(params["g2"], Ep), be2=vec(params["be2"], Ep),
        w1=w1.astype(compute_dtype), b1=vec(params["b1"], Hp),
        w2=w2.astype(compute_dtype), b2=vec(params["b2"], Ep),
    )
    return padded, Ep, Hp


def self_encoder_block(x, params, num_heads, *, compute_dtype=jnp.float32, q_tile=None):
    """x: (B, S, E) float32. Returns (B, S, E).

    compute_dtype: dtype of MXU matmul operands (weights + cast activations);
    accumulation is always f32.  Use jnp.bfloat16 on v6e/v7x for ~3x MXU rate and half
    the resident-weight VMEM footprint (loosen output tolerance accordingly).
    """
    B, S, E = x.shape
    Hf = params["w1"].shape[1]
    p, Ep, Hp = _build_padded_params(params, num_heads, E, Hf, compute_dtype)

    # Query-row tiling: many lane-dense grid steps per batch element once S is large.
    if q_tile is None:
        q_tile = min(S, 512)
    q_tile = min(q_tile, S)
    if S % q_tile != 0 or q_tile % 8 != 0:
        q_tile = S
    nq = S // q_tile

    xp = jnp.pad(x, ((0, 0), (0, 0), (0, Ep - E))) if Ep != E else x

    kernel = functools.partial(encoder_block_kernel, num_heads, E, nq, q_tile,
                               compute_dtype)

    def wspec(shape):
        # Constant index_map + single buffer: DMA'd once, stays resident in VMEM,
        # no wasted double-buffer.
        return pl.BlockSpec(shape, lambda b, qi: (0, 0),
                            pipeline_mode=pl.Buffered(1))

    weight_bytes = sum(int(v.size) * v.dtype.itemsize for v in p.values())

    # Advisory cost hint for the XLA scheduler.
    steps = B * nq
    Dp = Ep // num_heads
    flops = steps * (2 * S * Ep * 3 * Ep                        # fused QKV
                     + 4 * num_heads * q_tile * S * Dp          # energy + att@v
                     + 2 * q_tile * Ep * Ep                     # output projection
                     + 4 * q_tile * Ep * Hp)                    # FFN
    transcendentals = steps * (num_heads * q_tile * S + q_tile * Hp + S + q_tile)
    bytes_accessed = steps * S * Ep * 4 + B * S * Ep * 4 + weight_bytes
    cost = pl.CostEstimate(flops=int(flops), transcendentals=int(transcendentals),
                           bytes_accessed=int(bytes_accessed))

    # Explicit scoped-VMEM limit (defaults: 16 MiB v5e / 32 MiB v6e,v7x).
    vmem_limit = int(min(100 * 2**20,
                         max(32 * 2**20, weight_bytes + 8 * S * Ep * 4 + (4 << 20))))

    out = pl.pallas_call(
        kernel,
        out_shape=jax.ShapeDtypeStruct((B, S, Ep), x.dtype),
        grid_spec=pltpu.PrefetchScalarGridSpec(
            num_scalar_prefetch=0,
            grid=(B, nq),
            in_specs=[
                # Full (padded) sequence of one batch element; index_map ignores the
                # q-tile axis so it is DMA'd once per batch and revisited across tiles.
                pl.BlockSpec((None, S, Ep), lambda b, qi: (b, 0, 0)),
                wspec((1, Ep)),        # LN1 gamma
                wspec((1, Ep)),        # LN1 beta
                wspec((Ep, 3 * Ep)),   # fused Wqkv (Q columns pre-scaled by 1/sqrt(E))
                wspec((Ep, Ep)),       # W_proj
                wspec((1, Ep)),        # LN2 gamma
                wspec((1, Ep)),        # LN2 beta
                wspec((Ep, Hp)),       # FFN W1
                wspec((1, Hp)),        # FFN b1
                wspec((Hp, Ep)),       # FFN W2
                wspec((1, Ep)),        # FFN b2
            ],
            out_specs=pl.BlockSpec((None, q_tile, Ep), lambda b, qi: (b, qi, 0)),
        ),
        compiler_params=pltpu.CompilerParams(
            dimension_semantics=("parallel", "parallel"),
            vmem_limit_bytes=vmem_limit,
        ),
        cost_estimate=cost,
    )(xp,
      p["g1"], p["be1"], p["wqkv"], p["wp"],
      p["g2"], p["be2"], p["w1"], p["b1"], p["w2"], p["b2"])

    return out[..., :E] if Ep != E else out


def reference_block(x, p, num_heads):
    """Plain-JAX reference (HIGHEST matmul precision), dropout = identity."""
    hp = jax.lax.Precision.HIGHEST
    B, S, E = x.shape
    D = E // num_heads

    def ln(v, g, b, eps=1e-5):
        m = jnp.mean(v, -1, keepdims=True)
        var = jnp.mean((v - m) ** 2, -1, keepdims=True)
        return (v - m) / jnp.sqrt(var + eps) * g + b

    xn = ln(x, p["g1"], p["be1"])
    q = jnp.einsum("bse,ef->bsf", xn, p["wq"], precision=hp)
    k = jnp.einsum("bse,ef->bsf", xn, p["wk"], precision=hp)
    v = jnp.einsum("bse,ef->bsf", xn, p["wv"], precision=hp)
    q = q.reshape(B, S, num_heads, D).transpose(0, 2, 1, 3)
    k = k.reshape(B, S, num_heads, D).transpose(0, 2, 1, 3)
    v = v.reshape(B, S, num_heads, D).transpose(0, 2, 1, 3)
    energy = jnp.einsum("bhqd,bhkd->bhqk", q, k, precision=hp)
    att = jax.nn.softmax(energy / math.sqrt(E), axis=-1)
    o = jnp.einsum("bhqk,bhkd->bhqd", att, v, precision=hp)
    o = o.transpose(0, 2, 1, 3).reshape(B, S, E)
    proj = jnp.einsum("bse,ef->bsf", o, p["wp"], precision=hp)
    y = proj + x
    yn = ln(y, p["g2"], p["be2"])
    h = jnp.einsum("bse,eh->bsh", yn, p["w1"], precision=hp) + p["b1"]
    h = 0.5 * h * (1.0 + jax.lax.erf(h / math.sqrt(2.0)))
    f = jnp.einsum("bsh,he->bse", h, p["w2"], precision=hp) + p["b2"]
    return f + y


if __name__ == "__main__":
    key = jax.random.PRNGKey(0)
    batch, seq, emb = 2, 8, 32
    num_heads = 4
    expansion = 2
    hidden = expansion * emb

    keys = jax.random.split(key, 14)
    x = jax.random.normal(keys[0], (batch, seq, emb), dtype=jnp.float32)

    lim_e = 1.0 / math.sqrt(emb)
    lim_h = 1.0 / math.sqrt(hidden)
    # Weights stored as (in_features, out_features), i.e. already transposed relative to
    # torch nn.Linear.weight.  Attention linears have bias=False.  LN params made
    # non-trivial so the padded-LN path is actually exercised.
    params = dict(
        g1=1.0 + 0.1 * jax.random.normal(keys[9], (1, emb), jnp.float32),
        be1=0.1 * jax.random.normal(keys[10], (1, emb), jnp.float32),
        wq=jax.random.uniform(keys[1], (emb, emb), jnp.float32, -lim_e, lim_e),
        wk=jax.random.uniform(keys[2], (emb, emb), jnp.float32, -lim_e, lim_e),
        wv=jax.random.uniform(keys[3], (emb, emb), jnp.float32, -lim_e, lim_e),
        wp=jax.random.uniform(keys[4], (emb, emb), jnp.float32, -lim_e, lim_e),
        g2=1.0 + 0.1 * jax.random.normal(keys[11], (1, emb), jnp.float32),
        be2=0.1 * jax.random.normal(keys[12], (1, emb), jnp.float32),
        w1=jax.random.uniform(keys[5], (emb, hidden), jnp.float32, -lim_e, lim_e),
        b1=jax.random.uniform(keys[6], (1, hidden), jnp.float32, -lim_e, lim_e),
        w2=jax.random.uniform(keys[7], (hidden, emb), jnp.float32, -lim_h, lim_h),
        b2=jax.random.uniform(keys[8], (1, emb), jnp.float32, -lim_h, lim_h),
    )

    ref = reference_block(x, params, num_heads)

    # f32 MXU path: tight parity with the f32 reference.
    out = jax.block_until_ready(self_encoder_block(x, params, num_heads))
    assert out.shape == ref.shape
    err = float(jnp.max(jnp.abs(out - ref)))
    assert jnp.allclose(out, ref, atol=2e-4, rtol=2e-4), f"f32 max abs err = {err}"

    # bf16 MXU path (production default for v6e/v7x): looser parity against the f32 ref.
    out_bf = jax.block_until_ready(
        self_encoder_block(x, params, num_heads, compute_dtype=jnp.bfloat16))
    err_bf = float(jnp.max(jnp.abs(out_bf - ref)))
    assert jnp.allclose(out_bf, ref, atol=5e-2, rtol=5e-2), f"bf16 max abs err = {err_bf}"

    print("KERNEL_OK")
</pallas_src>

<mosaic_0001>
module attributes {stable_mosaic.version = 11 : i64} {
  func.func @encoder_block_kernel(%arg0: i32, %arg1: i32, %arg2: memref<1x8x128xf32, #tpu.memory_space<vmem>>, %arg3: memref<1x128xf32, #tpu.memory_space<vmem>>, %arg4: memref<1x128xf32, #tpu.memory_space<vmem>>, %arg5: memref<128x384xf32, #tpu.memory_space<vmem>>, %arg6: memref<128x128xf32, #tpu.memory_space<vmem>>, %arg7: memref<1x128xf32, #tpu.memory_space<vmem>>, %arg8: memref<1x128xf32, #tpu.memory_space<vmem>>, %arg9: memref<128x128xf32, #tpu.memory_space<vmem>>, %arg10: memref<1x128xf32, #tpu.memory_space<vmem>>, %arg11: memref<128x128xf32, #tpu.memory_space<vmem>>, %arg12: memref<1x128xf32, #tpu.memory_space<vmem>>, %arg13: memref<1x8x128xf32, #tpu.memory_space<vmem>>) attributes {dimension_semantics = [#tpu.dimension_semantics<parallel>, #tpu.dimension_semantics<parallel>], iteration_bounds = array<i64: 2, 1>, scalar_prefetch = 0 : i64, scratch_operands = 0 : i64, tpu.core_type = #tpu.core_type<tc>, window_params = [{transform_indices = @transform_0, window_bounds = array<i64: 1, 8, 128>}, {pipeline_mode = #tpu.pipeline_mode<synchronous>, transform_indices = @transform_1, window_bounds = array<i64: 1, 128>}, {pipeline_mode = #tpu.pipeline_mode<synchronous>, transform_indices = @transform_2, window_bounds = array<i64: 1, 128>}, {pipeline_mode = #tpu.pipeline_mode<synchronous>, transform_indices = @transform_3, window_bounds = array<i64: 128, 384>}, {pipeline_mode = #tpu.pipeline_mode<synchronous>, transform_indices = @transform_4, window_bounds = array<i64: 128, 128>}, {pipeline_mode = #tpu.pipeline_mode<synchronous>, transform_indices = @transform_5, window_bounds = array<i64: 1, 128>}, {pipeline_mode = #tpu.pipeline_mode<synchronous>, transform_indices = @transform_6, window_bounds = array<i64: 1, 128>}, {pipeline_mode = #tpu.pipeline_mode<synchronous>, transform_indices = @transform_7, window_bounds = array<i64: 128, 128>}, {pipeline_mode = #tpu.pipeline_mode<synchronous>, transform_indices = @transform_8, window_bounds = array<i64: 1, 128>}, {pipeline_mode = #tpu.pipeline_mode<synchronous>, transform_indices = @transform_9, window_bounds = array<i64: 128, 128>}, {pipeline_mode = #tpu.pipeline_mode<synchronous>, transform_indices = @transform_10, window_bounds = array<i64: 1, 128>}, {transform_indices = @transform_11, window_bounds = array<i64: 1, 8, 128>}]} {
    %c0 = arith.constant 0 : index
    %c0_0 = arith.constant 0 : index
    %c0_1 = arith.constant 0 : index
    %0 = vector.load %arg2[%c0, %c0_0, %c0_1] : memref<1x8x128xf32, #tpu.memory_space<vmem>>, vector<1x8x128xf32>
    %1 = vector.shape_cast %0 : vector<1x8x128xf32> to vector<8x128xf32>
    %cst = arith.constant dense<0.000000e+00> : vector<8xf32>
    %2 = vector.multi_reduction <add>, %1, %cst [1] : vector<8x128xf32> to vector<8xf32>
    %3 = vector.shape_cast %2 : vector<8xf32> to vector<8x1xf32>
    %cst_2 = arith.constant 3.125000e-02 : f32
    %4 = vector.broadcast %cst_2 : f32 to vector<8x1xf32>
    %5 = arith.mulf %3, %4 : vector<8x1xf32>
    %6 = arith.mulf %1, %1 : vector<8x128xf32>
    %cst_3 = arith.constant dense<0.000000e+00> : vector<8xf32>
    %7 = vector.multi_reduction <add>, %6, %cst_3 [1] : vector<8x128xf32> to vector<8xf32>
    %8 = vector.shape_cast %7 : vector<8xf32> to vector<8x1xf32>
    %cst_4 = arith.constant 3.125000e-02 : f32
    %9 = vector.broadcast %cst_4 : f32 to vector<8x1xf32>
    %10 = arith.mulf %8, %9 : vector<8x1xf32>
    %11 = arith.mulf %5, %5 : vector<8x1xf32>
    %12 = arith.subf %10, %11 : vector<8x1xf32>
    %13 = vector.broadcast %5 : vector<8x1xf32> to vector<8x128xf32>
    %14 = arith.subf %1, %13 : vector<8x128xf32>
    %cst_5 = arith.constant 9.99999974E-6 : f32
    %15 = vector.broadcast %cst_5 : f32 to vector<8x1xf32>
    %16 = arith.addf %12, %15 : vector<8x1xf32>
    %17 = math.rsqrt %16 : vector<8x1xf32>
    %18 = vector.broadcast %17 : vector<8x1xf32> to vector<8x128xf32>
    %19 = arith.mulf %14, %18 : vector<8x128xf32>
    %c0_6 = arith.constant 0 : index
    %c0_7 = arith.constant 0 : index
    %20 = vector.load %arg3[%c0_6, %c0_7] : memref<1x128xf32, #tpu.memory_space<vmem>>, vector<1x128xf32>
    %21 = vector.broadcast %20 : vector<1x128xf32> to vector<8x128xf32>
    %22 = arith.mulf %19, %21 : vector<8x128xf32>
    %c0_8 = arith.constant 0 : index
    %c0_9 = arith.constant 0 : index
    %23 = vector.load %arg4[%c0_8, %c0_9] : memref<1x128xf32, #tpu.memory_space<vmem>>, vector<1x128xf32>
    %24 = vector.broadcast %23 : vector<1x128xf32> to vector<8x128xf32>
    %25 = arith.addf %22, %24 : vector<8x128xf32>
    %c0_10 = arith.constant 0 : index
    %c0_11 = arith.constant 0 : index
    %26 = vector.load %arg5[%c0_10, %c0_11] : memref<128x384xf32, #tpu.memory_space<vmem>>, vector<128x384xf32>
    %cst_12 = arith.constant dense<0.000000e+00> : vector<8x384xf32>
    %27 = tpu.matmul %25, %26, %cst_12 {dimension_numbers = #tpu.dot_dimension_numbers<[1], [0], [0], [1], [0, 0, 1, 1], [], []>} : vector<8x128xf32>, vector<128x384xf32>, vector<8x384xf32> -> vector<8x384xf32>
    %28 = vector.extract_strided_slice %27 {offsets = [0, 0], sizes = [8, 128], strides = [1, 1]} : vector<8x384xf32> to vector<8x128xf32>
    %29 = vector.extract_strided_slice %27 {offsets = [0, 128], sizes = [8, 128], strides = [1, 1]} : vector<8x384xf32> to vector<8x128xf32>
    %30 = vector.extract_strided_slice %27 {offsets = [0, 256], sizes = [8, 128], strides = [1, 1]} : vector<8x384xf32> to vector<8x128xf32>
    %31 = vector.shape_cast %28 : vector<8x128xf32> to vector<8x4x32xf32>
    %32 = tpu.transpose %31, [1, 0, 2] : vector<8x4x32xf32> -> vector<4x8x32xf32>
    %33 = vector.shape_cast %29 : vector<8x128xf32> to vector<8x4x32xf32>
    %34 = tpu.transpose %33, [1, 0, 2] : vector<8x4x32xf32> -> vector<4x8x32xf32>
    %35 = vector.shape_cast %30 : vector<8x128xf32> to vector<8x4x32xf32>
    %36 = tpu.transpose %35, [1, 0, 2] : vector<8x4x32xf32> -> vector<4x8x32xf32>
    "tpu.trace_start"() <{level = 10 : i32, message = "hqd,hkd->hqk"}> : () -> ()
    %cst_13 = arith.constant dense<0.000000e+00> : vector<4x8x8xf32>
    %37 = tpu.matmul %32, %34, %cst_13 {dimension_numbers = #tpu.dot_dimension_numbers<[2], [2], [1], [1], [0, 0, 0, 1, 1, 1], [0], [0]>} : vector<4x8x32xf32>, vector<4x8x32xf32>, vector<4x8x8xf32> -> vector<4x8x8xf32>
    "tpu.trace_stop"() : () -> ()
    %cst_14 = arith.constant dense<0xFF800000> : vector<4x8xf32>
    %38 = vector.multi_reduction <maximumf>, %37, %cst_14 [2] : vector<4x8x8xf32> to vector<4x8xf32>
    %39 = vector.shape_cast %38 : vector<4x8xf32> to vector<4x8x1xf32>
    %40 = vector.broadcast %39 : vector<4x8x1xf32> to vector<4x8x8xf32>
    %41 = arith.subf %37, %40 : vector<4x8x8xf32>
    %42 = math.exp %41 : vector<4x8x8xf32>
    %cst_15 = arith.constant dense<0.000000e+00> : vector<4x8xf32>
    %43 = vector.multi_reduction <add>, %42, %cst_15 [2] : vector<4x8x8xf32> to vector<4x8xf32>
    %44 = vector.shape_cast %43 : vector<4x8xf32> to vector<4x8x1xf32>
    %45 = tpu.reciprocal %44 : vector<4x8x1xf32> -> vector<4x8x1xf32>
    %46 = vector.broadcast %45 : vector<4x8x1xf32> to vector<4x8x8xf32>
    %47 = arith.mulf %42, %46 : vector<4x8x8xf32>
    "tpu.trace_start"() <{level = 10 : i32, message = "hqk,hkd->hqd"}> : () -> ()
    %cst_16 = arith.constant dense<0.000000e+00> : vector<4x8x32xf32>
    %48 = tpu.matmul %47, %36, %cst_16 {dimension_numbers = #tpu.dot_dimension_numbers<[2], [1], [1], [2], [0, 0, 0, 1, 1, 2], [0], [0]>} : vector<4x8x8xf32>, vector<4x8x32xf32>, vector<4x8x32xf32> -> vector<4x8x32xf32>
    "tpu.trace_stop"() : () -> ()
    %49 = tpu.transpose %48, [1, 0, 2] : vector<4x8x32xf32> -> vector<8x4x32xf32>
    %50 = vector.shape_cast %49 : vector<8x4x32xf32> to vector<8x128xf32>
    %c0_17 = arith.constant 0 : index
    %c0_18 = arith.constant 0 : index
    %51 = vector.load %arg6[%c0_17, %c0_18] : memref<128x128xf32, #tpu.memory_space<vmem>>, vector<128x128xf32>
    %cst_19 = arith.constant dense<0.000000e+00> : vector<8x128xf32>
    %52 = tpu.matmul %50, %51, %cst_19 {dimension_numbers = #tpu.dot_dimension_numbers<[1], [0], [0], [1], [0, 0, 1, 1], [], []>} : vector<8x128xf32>, vector<128x128xf32>, vector<8x128xf32> -> vector<8x128xf32>
    %53 = arith.addf %52, %1 : vector<8x128xf32>
    %cst_20 = arith.constant dense<0.000000e+00> : vector<8xf32>
    %54 = vector.multi_reduction <add>, %53, %cst_20 [1] : vector<8x128xf32> to vector<8xf32>
    %55 = vector.shape_cast %54 : vector<8xf32> to vector<8x1xf32>
    %cst_21 = arith.constant 3.125000e-02 : f32
    %56 = vector.broadcast %cst_21 : f32 to vector<8x1xf32>
    %57 = arith.mulf %55, %56 : vector<8x1xf32>
    %58 = arith.mulf %53, %53 : vector<8x128xf32>
    %cst_22 = arith.constant dense<0.000000e+00> : vector<8xf32>
    %59 = vector.multi_reduction <add>, %58, %cst_22 [1] : vector<8x128xf32> to vector<8xf32>
    %60 = vector.shape_cast %59 : vector<8xf32> to vector<8x1xf32>
    %cst_23 = arith.constant 3.125000e-02 : f32
    %61 = vector.broadcast %cst_23 : f32 to vector<8x1xf32>
    %62 = arith.mulf %60, %61 : vector<8x1xf32>
    %63 = arith.mulf %57, %57 : vector<8x1xf32>
    %64 = arith.subf %62, %63 : vector<8x1xf32>
    %65 = vector.broadcast %57 : vector<8x1xf32> to vector<8x128xf32>
    %66 = arith.subf %53, %65 : vector<8x128xf32>
    %cst_24 = arith.constant 9.99999974E-6 : f32
    %67 = vector.broadcast %cst_24 : f32 to vector<8x1xf32>
    %68 = arith.addf %64, %67 : vector<8x1xf32>
    %69 = math.rsqrt %68 : vector<8x1xf32>
    %70 = vector.broadcast %69 : vector<8x1xf32> to vector<8x128xf32>
    %71 = arith.mulf %66, %70 : vector<8x128xf32>
    %c0_25 = arith.constant 0 : index
    %c0_26 = arith.constant 0 : index
    %72 = vector.load %arg7[%c0_25, %c0_26] : memref<1x128xf32, #tpu.memory_space<vmem>>, vector<1x128xf32>
    %73 = vector.broadcast %72 : vector<1x128xf32> to vector<8x128xf32>
    %74 = arith.mulf %71, %73 : vector<8x128xf32>
    %c0_27 = arith.constant 0 : index
    %c0_28 = arith.constant 0 : index
    %75 = vector.load %arg8[%c0_27, %c0_28] : memref<1x128xf32, #tpu.memory_space<vmem>>, vector<1x128xf32>
    %76 = vector.broadcast %75 : vector<1x128xf32> to vector<8x128xf32>
    %77 = arith.addf %74, %76 : vector<8x128xf32>
    %c0_29 = arith.constant 0 : index
    %c0_30 = arith.constant 0 : index
    %78 = vector.load %arg9[%c0_29, %c0_30] : memref<128x128xf32, #tpu.memory_space<vmem>>, vector<128x128xf32>
    %cst_31 = arith.constant dense<0.000000e+00> : vector<8x128xf32>
    %79 = tpu.matmul %77, %78, %cst_31 {dimension_numbers = #tpu.dot_dimension_numbers<[1], [0], [0], [1], [0, 0, 1, 1], [], []>} : vector<8x128xf32>, vector<128x128xf32>, vector<8x128xf32> -> vector<8x128xf32>
    %c0_32 = arith.constant 0 : index
    %c0_33 = arith.constant 0 : index
    %80 = vector.load %arg10[%c0_32, %c0_33] : memref<1x128xf32, #tpu.memory_space<vmem>>, vector<1x128xf32>
    %81 = vector.broadcast %80 : vector<1x128xf32> to vector<8x128xf32>
    %82 = arith.addf %79, %81 : vector<8x128xf32>
    %cst_34 = arith.constant 5.000000e-01 : f32
    %83 = vector.broadcast %cst_34 : f32 to vector<8x128xf32>
    %84 = arith.mulf %83, %82 : vector<8x128xf32>
    %cst_35 = arith.constant 0.707106769 : f32
    %85 = vector.broadcast %cst_35 : f32 to vector<8x128xf32>
    %86 = arith.mulf %82, %85 : vector<8x128xf32>
    %87 = math.erf %86 : vector<8x128xf32>
    %cst_36 = arith.constant 1.000000e+00 : f32
    %88 = vector.broadcast %cst_36 : f32 to vector<8x128xf32>
    %89 = arith.addf %88, %87 : vector<8x128xf32>
    %90 = arith.mulf %84, %89 : vector<8x128xf32>
    %c0_37 = arith.constant 0 : index
    %c0_38 = arith.constant 0 : index
    %91 = vector.load %arg11[%c0_37, %c0_38] : memref<128x128xf32, #tpu.memory_space<vmem>>, vector<128x128xf32>
    %cst_39 = arith.constant dense<0.000000e+00> : vector<8x128xf32>
    %92 = tpu.matmul %90, %91, %cst_39 {dimension_numbers = #tpu.dot_dimension_numbers<[1], [0], [0], [1], [0, 0, 1, 1], [], []>} : vector<8x128xf32>, vector<128x128xf32>, vector<8x128xf32> -> vector<8x128xf32>
    %c0_40 = arith.constant 0 : index
    %c0_41 = arith.constant 0 : index
    %93 = vector.load %arg12[%c0_40, %c0_41] : memref<1x128xf32, #tpu.memory_space<vmem>>, vector<1x128xf32>
    %94 = vector.broadcast %93 : vector<1x128xf32> to vector<8x128xf32>
    %95 = arith.addf %92, %94 : vector<8x128xf32>
    %96 = arith.addf %95, %53 : vector<8x128xf32>
    %c0_42 = arith.constant 0 : index
    %c0_43 = arith.constant 0 : index
    %c0_44 = arith.constant 0 : index
    %97 = vector.load %arg13[%c0_42, %c0_43, %c0_44] : memref<1x8x128xf32, #tpu.memory_space<vmem>>, vector<1x8x128xf32>
    %98 = vector.shape_cast %97 : vector<1x8x128xf32> to vector<8x128xf32>
    %99 = vector.shape_cast %96 : vector<8x128xf32> to vector<1x8x128xf32>
    tpu.vector_store %arg13[%c0_42, %c0_43, %c0_44], %99 {strides = array<i32>} : memref<1x8x128xf32, #tpu.memory_space<vmem>>, vector<1x8x128xf32>,
    return
  }
  func.func @transform_0(%arg0: i32, %arg1: i32) -> (i32, i32, i32) {
    %c0_i32 = arith.constant 0 : i32
    %c0_i32_0 = arith.constant 0 : i32
    %c0_i32_1 = arith.constant 0 : i32
    return %arg0, %c0_i32, %c0_i32_0 : i32, i32, i32
  }
  func.func @transform_1(%arg0: i32, %arg1: i32) -> (i32, i32) {
    %c0_i32 = arith.constant 0 : i32
    %c0_i32_0 = arith.constant 0 : i32
    %c0_i32_1 = arith.constant 0 : i32
    return %c0_i32, %c0_i32_0 : i32, i32
  }
  func.func @transform_2(%arg0: i32, %arg1: i32) -> (i32, i32) {
    %c0_i32 = arith.constant 0 : i32
    %c0_i32_0 = arith.constant 0 : i32
    %c0_i32_1 = arith.constant 0 : i32
    return %c0_i32, %c0_i32_0 : i32, i32
  }
  func.func @transform_3(%arg0: i32, %arg1: i32) -> (i32, i32) {
    %c0_i32 = arith.constant 0 : i32
    %c0_i32_0 = arith.constant 0 : i32
    %c0_i32_1 = arith.constant 0 : i32
    return %c0_i32, %c0_i32_0 : i32, i32
  }
  func.func @transform_4(%arg0: i32, %arg1: i32) -> (i32, i32) {
    %c0_i32 = arith.constant 0 : i32
    %c0_i32_0 = arith.constant 0 : i32
    %c0_i32_1 = arith.constant 0 : i32
    return %c0_i32, %c0_i32_0 : i32, i32
  }
  func.func @transform_5(%arg0: i32, %arg1: i32) -> (i32, i32) {
    %c0_i32 = arith.constant 0 : i32
    %c0_i32_0 = arith.constant 0 : i32
    %c0_i32_1 = arith.constant 0 : i32
    return %c0_i32, %c0_i32_0 : i32, i32
  }
  func.func @transform_6(%arg0: i32, %arg1: i32) -> (i32, i32) {
    %c0_i32 = arith.constant 0 : i32
    %c0_i32_0 = arith.constant 0 : i32
    %c0_i32_1 = arith.constant 0 : i32
    return %c0_i32, %c0_i32_0 : i32, i32
  }
  func.func @transform_7(%arg0: i32, %arg1: i32) -> (i32, i32) {
    %c0_i32 = arith.constant 0 : i32
    %c0_i32_0 = arith.constant 0 : i32
    %c0_i32_1 = arith.constant 0 : i32
    return %c0_i32, %c0_i32_0 : i32, i32
  }
  func.func @transform_8(%arg0: i32, %arg1: i32) -> (i32, i32) {
    %c0_i32 = arith.constant 0 : i32
    %c0_i32_0 = arith.constant 0 : i32
    %c0_i32_1 = arith.constant 0 : i32
    return %c0_i32, %c0_i32_0 : i32, i32
  }
  func.func @transform_9(%arg0: i32, %arg1: i32) -> (i32, i32) {
    %c0_i32 = arith.constant 0 : i32
    %c0_i32_0 = arith.constant 0 : i32
    %c0_i32_1 = arith.constant 0 : i32
    return %c0_i32, %c0_i32_0 : i32, i32
  }
  func.func @transform_10(%arg0: i32, %arg1: i32) -> (i32, i32) {
    %c0_i32 = arith.constant 0 : i32
    %c0_i32_0 = arith.constant 0 : i32
    %c0_i32_1 = arith.constant 0 : i32
    return %c0_i32, %c0_i32_0 : i32, i32
  }
  func.func @transform_11(%arg0: i32, %arg1: i32) -> (i32, i32, i32) {
    %c0_i32 = arith.constant 0 : i32
    %c0_i32_0 = arith.constant 0 : i32
    return %arg0, %arg1, %c0_i32 : i32, i32, i32
  }
}

</mosaic_0001>

<bundles_post_ra>
// kernel: tpu_custom_call.1
= control target key start
LH: loop header
LB: loop body
LE: loop exit
PB: predicated region body
PF: predicated region fallthrough
CT: control target
= control target key end

     0   :  { %s3568_s0 = inlined_call_operand.hbm [shape: f32[2,8,128], index: 0, kind: input, shape index: {}]   ;;  %s3569_s1 = inlined_call_operand.vmem [shape: f32[1,128], index: 1, kind: input, shape index: {}]   ;;  %s3570_s2 = inlined_call_operand.vmem [shape: f32[1,128], index: 2, kind: input, shape index: {}]   ;;  %s3571_s3 = inlined_call_operand.hbm [shape: f32[128,384], index: 3, kind: input, shape index: {}]   ;;  %s3572_s4 = inlined_call_operand.hbm [shape: f32[128,128], index: 4, kind: input, shape index: {}]   ;;  %s3573_s5 = inlined_call_operand.vmem [shape: f32[1,128], index: 5, kind: input, shape index: {}]   ;;  %s3574_s6 = inlined_call_operand.vmem [shape: f32[1,128], index: 6, kind: input, shape index: {}]   ;;  %s3575_s7 = inlined_call_operand.hbm [shape: f32[128,128], index: 7, kind: input, shape index: {}]   ;;  %s3576_s8 = inlined_call_operand.vmem [shape: f32[1,128], index: 8, kind: input, shape index: {}]   ;;  %s3577_s9 = inlined_call_operand.hbm [shape: f32[128,128], index: 9, kind: input, shape index: {}]   ;;  %s3578_s10 = inlined_call_operand.vmem [shape: f32[1,128], index: 10, kind: input, shape index: {}]   ;;  %s3579_s11 = inlined_call_operand.hbm [shape: f32[2,8,128], index: 11, kind: output, shape index: {}]  }
   0x1   :  { %3584 = sst [smem:[#allocation19_spill]] %s3571_s3 }
   0x2   :  { %3585 = sst [smem:[#allocation20_spill]] %s3572_s4 }
   0x3   :  { %3586 = sst [smem:[#allocation21_spill]] %s3575_s7 }
   0x4   :  { %3587 = sst [smem:[#allocation22_spill]] %s3577_s9 }
   0x5   :  { %3588 = sst [smem:[#allocation23_spill]] %s3579_s11 }
   0x6   :  { %16 = vsyncpa [#allocation3], 0 }
   0x7   :  { %18 = vsyncpa [#allocation3 + $0x1], 0 }
   0x8   :  { %19 = vsyncpa [#allocation6], 0 }
   0x9   :  { %20 = vsyncpa [#allocation9], 0 }
   0xa   :  { %21 = vsyncpa [#allocation4], 0 }
   0xb   :  { %23 = vsyncpa [#allocation4 + $0x1], 0  ;;  %s3112_s17 = smov 0   ;;  %s3114_s18 = smov 0  }
   0xc   :  { %s3116_s19 = smov 0   ;;  %s3118_s20 = smov 0  }
   0xd   :  { %s3120_s21 = smov 0   ;;  %s3122_s22 = smov 0  }
   0xe LB: > { %3589 = sst [smem:[#allocation16_spill]] %s3029_s21  ;;  %s3580_s23 = sadd.s32 4294967295, %s3033_s22   ;;  %s3033_s22 = sphi %s3122_s22, %s29_s22   ;;  %s3029_s21 = sphi %s3120_s21, %s3610_s21   ;;  %s3025_s20 = sphi %s3118_s20, %s3609_s20   ;;  %s3021_s19 = sphi %s3116_s19, %s3613_s19   ;;  %s3017_s18 = sphi %s3114_s18, %s3612_s18   ;;  %s3013_s17 = sphi %s3112_s17, %s3611_s17  }
   0xf   : > { %p2368_p0 = scmp.ge.s32.totalorder %s3033_s22, 1  ;;  %p3146_p1 = scmp.eq.s32.totalorder %s3580_s23, 0 }
  0x10   : > { %p310_p2 = scmp.lt.s32.totalorder %s3033_s22, 3  ;;  %s3035_s26 = smov [#allocation5]  }
  0x11   : > { %s328_s27 = sshll.u32 %s3035_s26, 4  ;;  %s3036_s29 = smov [#allocation8]   ;;  %s329_s27 = int_to_ptr.vmem [resolvable:$true] %s328_s27 }
  0x12   : > { %p3151_p3 = pnand %p2368_p0, %p310_p2  ;;  %s360_s30 = sshll.u32 %s3036_s29, 4  ;;  %s361_s30 = int_to_ptr.vmem [resolvable:$true] %s360_s30 }
  0x13   : > { %s2824_s12 = scalar_lea.vmem %s329_s27, 6144  ;;  %p2832_p11 = scmp.lt.s32.totalorder %s329_s27, %s329_s27 }
  0x14   : > { %p2697_p4 = pneg %p3151_p3  ;;  %p2825_p8 = scmp.ne.s32.totalorder %s329_s27, %s2824_s12 }
  0x15   : > { %p2833_p12 = scmp.lt.s32.totalorder %s2824_s12, %s2824_s12 }
  0x16   : > { %p3160_p6 = pnand %p2697_p4, %p3146_p1 }
  0x17   : > { %p2834_p13 = por %p2833_p12, %p2832_p11 }
  0x18   : > { %p2815_p7 = pneg %p3160_p6 }
  0x1a   : > { %p2827_p9 = pnand %p2825_p8, %p2815_p7 }
  0x1c   : > { %p2828_p10 = pneg %p2827_p9 }
  0x1e   : > { %p2835_p0 = pnand %p2834_p13, %p2828_p10 }
  0x20   : > { %2838 = shalt.err (!%p2835_p0)
}
  0x21   : > { %s3037_s13 = smov 384   ;;  %s3038_s14 = smov 24  }
  0x22   : > { %s3593_s3 = sld [smem:[#allocation19_spill]]  ;;  %s3039_s26 = smov [#allocation7]  }
  0x23   : > { %s341_s29 = sshll.u32 %s3039_s26, 4  ;;  %s2850_s23 = scalar_lea.vmem %s361_s30, 2048  ;;  %s342_s29 = int_to_ptr.vmem [resolvable:$true] %s341_s29 }
  0x24   : > { %p2851_p2 = scmp.ne.s32.totalorder %s361_s30, %s2850_s23  ;;  %p2858_p9 = scmp.lt.s32.totalorder %s361_s30, %s361_s30 }
  0x25   : > { %p2859_p10 = scmp.lt.s32.totalorder %s2850_s23, %s2850_s23 }
  0x26   : > { %p2853_p4 = pnand %p2851_p2, %p2815_p7 }
  0x27   : > { %p2860_p11 = por %p2859_p10, %p2858_p9 }
  0x28   : > { %2700 = dma.hbm_to_vmem [thread:$0]  (!%p3160_p6), %s3593_s3, 6144, %s329_s27, [#allocation6], %s3037_s13, %s3037_s13, %s3038_s14  }
  0x29   : > { %p2854_p8 = pneg %p2853_p4 }
  0x2b   : > { %p2861_p12 = pnand %p2860_p11, %p2854_p8 }
  0x2d   : > { %2864 = shalt.err (!%p2861_p12)
}
  0x2e   : > { %s3040_s12 = smov 128   ;;  %s3041_s11 = smov 8  }
  0x2f   : > { %s3594_s7 = sld [smem:[#allocation21_spill]]  ;;  %s2876_s14 = scalar_lea.vmem %s342_s29, 2048 }
  0x30   : > { %p2877_p13 = scmp.ne.s32.totalorder %s342_s29, %s2876_s14  ;;  %p2884_p4 = scmp.lt.s32.totalorder %s342_s29, %s342_s29 }
  0x31   : > { %p2885_p9 = scmp.lt.s32.totalorder %s2876_s14, %s2876_s14 }
  0x32   : > { %p2879_p0 = pnand %p2877_p13, %p2815_p7 }
  0x33   : > { %p2886_p8 = por %p2885_p9, %p2884_p4 }
  0x34   : > { %p2880_p2 = pneg %p2879_p0 }
  0x35   : > { %2706 = dma.hbm_to_vmem [thread:$0]  (!%p3160_p6), %s3594_s7, 2048, %s361_s30, [#allocation9], %s3040_s12, %s3040_s12, %s3041_s11  }
  0x36   : > { %p2887_p10 = pnand %p2886_p8, %p2880_p2 }
  0x38   : > { %2890 = shalt.err (!%p2887_p10)
}
  0x39   : > { %s3595_s4 = sld [smem:[#allocation20_spill]]  ;;  %s3042_s30 = smov [#allocation10]  }
  0x3a   : > { %s376_s16 = sshll.u32 %s3042_s30, 4  ;;  %s377_s16 = int_to_ptr.vmem [resolvable:$true] %s376_s16 }
  0x3b   : > { %s2902_s26 = scalar_lea.vmem %s377_s16, 2048  ;;  %p2910_p0 = scmp.lt.s32.totalorder %s377_s16, %s377_s16 }
  0x3c   : > { %p2903_p11 = scmp.ne.s32.totalorder %s377_s16, %s2902_s26  ;;  %p2911_p4 = scmp.lt.s32.totalorder %s2902_s26, %s2902_s26 }
  0x3e   : > { %p2905_p12 = pnand %p2903_p11, %p2815_p7  ;;  %p2912_p2 = por %p2911_p4, %p2910_p0 }
  0x3f   : > { %2703 = dma.hbm_to_vmem [thread:$0]  (!%p3160_p6), %s3595_s4, 2048, %s342_s29, [#allocation6], %s3040_s12, %s3040_s12, %s3041_s11  }
  0x40   : > { %p2906_p13 = pneg %p2905_p12 }
  0x42   : > { %p2913_p9 = pnand %p2912_p2, %p2906_p13 }
  0x44   : > { %2916 = shalt.err (!%p2913_p9)
}
  0x45   : > { %s3596_s9 = sld [smem:[#allocation22_spill]]  ;;  %s2367_s29 = sadd.s32 4294967294, %s3033_s22  }
  0x46   : > { %s41_s14 = sadd.s32 1, %s3029_s21  ;;  %s48_s28 = sadd.s32 1, %s3021_s19 }
  0x47   : > { %p43_p7 = scmp.ge.s32.totalorder %s41_s14, 2  ;;  %p55_p8 = scmp.ne.s32.totalorder %s3021_s19, %s3017_s18 }
  0x48   : > { %p56_p10 = scmp.eq.s32.totalorder %s3033_s22, 0  ;;  %p61_p12 = scmp.ne.s32.totalorder %s3017_s18, %s3013_s17 }
  0x49   : > { %s3615_s14 = smov (%p43_p7, %s41_s14), 0  ;;  %p303_p2 = scmp.eq.s32.totalorder %s2367_s29, 1 }
  0x4a   : > { %3597 = sst [smem:[#allocation17_spill]] %s3615_s14  ;;  %p3206_p11 = por %p56_p10, %p55_p8 }
  0x4b   : > { %2709 = dma.hbm_to_vmem [thread:$0]  (!%p3160_p6), %s3596_s9, 2048, %s377_s16, [#allocation9], %s3040_s12, %s3040_s12, %s3041_s11  }
  0x4c   : > { %s45_s11 = ssub.s32 %s3029_s21, %s3615_s14  ;;  %s3599_s12 = sadd.s32 4294967295, %s3033_s22  }
  0x4d   : > { %p297_p6 = scmp.eq.s32.totalorder %s3599_s12, 1  ;;  %p46_p13 = scmp.eq.s32.totalorder %s45_s11, 0 }
  0x4e   : > { %p3218_p0 = por %p3146_p1, %p61_p12  ;;  %p3229_p9 = por %p303_p2, %p61_p12 }
  0x4f   : > { %p3222_p4 = por %p297_p6, %p55_p8  ;;  %p2722_p7 = scmp.lt.s32.totalorder %s3033_s22, 2 }
  0x50   : > { %s3227_s16 = scalar_select %p46_p13, %s3021_s19, %s48_s28  }
  0x51   : > { %s3603_s26 = scalar_select %p3229_p9, 1, 0 }
  0x52   : > { %3602 = sst [smem:[#allocation18_spill]] %s3227_s16  ;;  %s393_s27 = sand.u32 1, %s3021_s19  }
  0x53   : > { %s2375_s13 = sshll.u32 %s3029_s21, 7  ;;  %s2374_s11 = sshll.u32 %s393_s27, 3 }
  0x54   : > { %s402_s4 = scalar_lea.hbm %s3568_s0, %s2375_s13  ;;  %s397_s7 = scalar_lea.vmem [#allocation2], %s2374_s11 }
  0x55   : > { %s404_s9 = sshll.u32 %s397_s7, 4  ;;  %p3241_p8 = pnand %p2722_p7, %p3206_p11  ;;  %s405_s9 = int_to_ptr.vmem [resolvable:$true] %s404_s9 }
  0x56   : > { %s394_s29 = scalar_lea.sflag [#allocation3], %s393_s27  ;;  %s2930_s28 = scalar_lea.vmem %s405_s9, 128 }
  0x57   : > { %p2919_p10 = pneg %p3241_p8  ;;  %p2931_p12 = scmp.ne.s32.totalorder %s405_s9, %s2930_s28 }
  0x58   : > { %s3043_s21 = smov [#allocation2]  }
  0x59   : > { %p2933_p6 = pnand %p2931_p12, %p2919_p10  ;;  %s2935_s16 = sshll.u32 %s3043_s21, 4  ;;  %s2936_s16 = int_to_ptr.vmem [resolvable:$false] %s2935_s16 }
  0x5a   : > { %s2937_s3 = scalar_lea.vmem %s2936_s16, 256  ;;  %p2938_p2 = scmp.lt.s32.totalorder %s405_s9, %s2936_s16 }
  0x5b   : > { %p2934_p13 = pneg %p2933_p6  ;;  %p2939_p5 = scmp.lt.s32.totalorder %s2937_s3, %s2930_s28 }
  0x5d   : > { %p2940_p9 = por %p2939_p5, %p2938_p2 }
  0x5f   : > { %p2941_p11 = pnand %p2940_p9, %p2934_p13 }
  0x61   : > { %2944 = shalt.err (!%p2941_p11)
}
  0x62   : > { %2713 = dma.hbm_to_vmem [thread:$0]  (!%p3241_p8), %s402_s4, 128, %s405_s9, %s394_s29  }
  0x63   : > { %413 = sbr.rel (%p3151_p3) target bundleno = 2307 (0x903), region = 64  ;;  %s3252_s7 = sand.u32 (!%p3151_p3), 1, %s3017_s18  }
  0x64   : > { %s2377_s21 = sshll.u32 (!%p3151_p3), %s3252_s7, 3  ;;  %s416_s23 = scalar_lea.sflag (!%p3151_p3), [#allocation3], %s3252_s7 }
  0x65   : > { %s419_s16 = scalar_lea.vmem (!%p3151_p3), [#allocation2], %s2377_s21 }
  0x68   : > { %2996 = dma.done.wait (%p3218_p0), %s416_s23, 128  }
  0x69   : > { %2998 = vsyncadd (%p3218_p0), %s416_s23, 4294967168 }
  0x6a   : > { %3000 = dma.done.wait (%p3146_p1), [#allocation6], 8192  }
  0x6b   : > { %3002 = vsyncadd (%p3146_p1), [#allocation6], 4294959104 }
  0x6c   : > { %3004 = dma.done.wait (%p3146_p1), [#allocation9], 4096  }
  0x6d   : > { %3006 = vsyncadd (%p3146_p1), [#allocation9], 4294963200  ;;  %v3044_v0 = vmov 0.0   ;;  %v3272_v1 = vld [vmem:[%s419_s16] sm:$0xff]  ;;  %v549_v3 = vld [vmem:[#allocation5 + $0x168] sm:$0xff]  ;;  %vm3045_vm0 = vmmov 0  }
  0x6e   : > { %2497 = vmatprep.subr.mxu1 %v3044_v0  ;;  %616 = vmatprep.mubr.f32.mxu0 %v3044_v0  ;;  %v550_v2 = vld [vmem:[#allocation5 + $0x170] sm:$0xff]  ;;  %v478_v4 = vmul.f32 %v3272_v1, %v3272_v1  ;;  %v551_v5 = vld [vmem:[#allocation5 + $0x178] sm:$0xff]  ;;  %v548_v8 = vld [vmem:[#allocation5 + $0x160] sm:$0xff]  ;;  %s3046_s14 = smov 32   ;;  %s3047_s15 = smov 96   ;;  %vm1131_vm1 = vcmask 261120  }
  0x6f   : > { %475 = vadd.xlane.f32.xlu0 %v3272_v1  ;;  %552 = vmatprep.subr.mxu0 %v550_v2  ;;  %v547_v6 = vld [vmem:[#allocation5 + $0x158] sm:$0xff]  ;;  %v546_v7 = vld [vmem:[#allocation5 + $0x150] sm:$0xff]  ;;  %v544_v9 = vld [vmem:[#allocation5 + $0x140] sm:$0xff]  ;;  %s3048_s27 = smov 64   ;;  %vm1436_vm2 = vcmask 64512   ;;  %vm1922_vm3 = vcmask 523264  }
  0x70   : > { %553 = vmatpush1.msra.mxu0 %v549_v3  ;;  %2498 = vmatpush3.msra.mxu1 %v551_v5  ;;  %v543_v10 = vld [vmem:[#allocation5 + $0x138] sm:$0xff]  ;;  %v545_v11 = vld [vmem:[#allocation5 + $0x148] sm:$0xff]  ;;  %v540_v13 = vld [vmem:[#allocation5 + $0x120] sm:$0xff]  ;;  %vm1924_vm4 = vcmask 785408   ;;  %s2410_s4 = sshll.u32 %s3025_s20, 7  ;;  %s473_s9 = scalar_lea.vmem [#allocation11], %s2377_s21 }
  0x71   : > { %2499 = vmatprep.subr.mxu1 %v3044_v0  ;;  %554 = vmatprep.subr.mxu0 %v547_v6  ;;  %v541_v12 = vld [vmem:[#allocation5 + $0x128] sm:$0xff]  ;;  %v542_v14 = vld [vmem:[#allocation5 + $0x130] sm:$0xff]  ;;  %v539_v17 = vld [vmem:[#allocation5 + $0x118] sm:$0xff]  ;;  %s2249_s24 = sshll.u32 %s473_s9, 4  ;;  %s2235_s13 = scalar_lea.sflag [#allocation4], %s3252_s7  ;;  %s2250_s24 = int_to_ptr.vmem [resolvable:$true] %s2249_s24 }
  0x72   : > { %555 = vmatpush1.msra.mxu0 %v546_v7  ;;  %2500 = vmatpush3.msra.mxu1 %v548_v8  ;;  %v538_v15 = vld [vmem:[#allocation5 + $0x110] sm:$0xff]  ;;  %v537_v16 = vld [vmem:[#allocation5 + $0x108] sm:$0xff]  ;;  %v535_v18 = vld [vmem:[#allocation5 + $0xf8] sm:$0xff]  ;;  %v3049_v7 = vmov 1983009808   ;;  %s2945_s11 = scalar_lea.vmem %s2250_s24, 128 }
  0x73   : > { %479 = vadd.xlane.f32.xlu0 %v478_v4  ;;  %556 = vmatprep.subr.mxu0 %v544_v9  ;;  %v534_v19 = vld [vmem:[#allocation5 + $0xf0] sm:$0xff]  ;;  %v536_v20 = vld [vmem:[#allocation5 + $0x100] sm:$0xff]  ;;  %v531_v22 = vld [vmem:[#allocation5 + $0xd8] sm:$0xff]  ;;  %v706_v8 = vunpack.c.l.s4 %v3049_v7  ;;  %v708_v9 = vlaneseq  ;;  %p2946_p1 = scmp.ne.s32.totalorder %s2250_s24, %s2945_s11  ;;  %s3051_s20 = smov [#allocation11]  }
  0x74   : > { %2501 = vmatprep.subr.mxu1 %v3044_v0  ;;  %557 = vmatpush1.msra.mxu0 %v543_v10  ;;  %v532_v21 = vld [vmem:[#allocation5 + $0xe0] sm:$0xff]  ;;  %v533_v23 = vld [vmem:[#allocation5 + $0xe8] sm:$0xff]  ;;  %v530_v26 = vld [vmem:[#allocation5 + $0xd0] sm:$0xff]  ;;  %v3050_v10 = vmov 1934713408   ;;  %s2949_s12 = sshll.u32 %s3051_s20, 4  ;;  %s2950_s12 = int_to_ptr.vmem [resolvable:$false] %s2949_s12 }
  0x75   : > { %2502 = vmatpush3.msra.mxu1 %v545_v11  ;;  %558 = vmatprep.subr.mxu0 %v541_v12  ;;  %v529_v24 = vld [vmem:[#allocation5 + $0xc8] sm:$0xff]  ;;  %v528_v25 = vld [vmem:[#allocation5 + $0xc0] sm:$0xff]  ;;  %v526_v27 = vld [vmem:[#allocation5 + $0xb0] sm:$0xff]  ;;  %v738_v11 = vunpack.c.l.s4 %v3050_v10  ;;  %v707_v12 = vunpack.c.0.s8 %v706_v8  ;;  %p2947_p3 = pnand %p2946_p1, %p3222_p4  ;;  %s2951_s21 = scalar_lea.vmem %s2950_s12, 256 }
  0x76   : > { %2503 = vmatprep.subr.mxu1 %v3044_v0  ;;  %559 = vmatpush1.msra.mxu0 %v540_v13  ;;  %v525_v28 = vld [vmem:[#allocation5 + $0xa8] sm:$0xff]  ;;  %v527_v29 = vld [vmem:[#allocation5 + $0xb8] sm:$0xff]  ;;  %v522_v31 = vld [vmem:[#allocation5 + $0x90] sm:$0xff]  ;;  %v709_v13 = vshrl.u32 %v708_v9, 7  ;;  %p2952_p0 = scmp.lt.s32.totalorder %s2250_s24, %s2950_s12  ;;  %p2953_p9 = scmp.lt.s32.totalorder %s2951_s21, %s2945_s11 }
  0x77   : > { %2504 = vmatpush3.msra.mxu1 %v542_v14  ;;  %560 = vmatprep.subr.mxu0 %v538_v15  ;;  %v523_v30 = vld [vmem:[#allocation5 + $0x98] sm:$0xff]  ;;  %v524_v32 = vld [vmem:[#allocation5 + $0xa0] sm:$0xff]  ;;  %v521_v35 = vld [vmem:[#allocation5 + $0x88] sm:$0xff]  ;;  %p2948_p5 = pneg %p2947_p3 }
  0x78   : > { %2505 = vmatprep.subr.mxu1 %v3044_v0  ;;  %561 = vmatpush1.msra.mxu0 %v537_v16  ;;  %v520_v33 = vld [vmem:[#allocation5 + $0x80] sm:$0xff]  ;;  %v519_v34 = vld [vmem:[#allocation5 + $0x78] sm:$0xff]  ;;  %v517_v36 = vld [vmem:[#allocation5 + $0x68] sm:$0xff]  ;;  %v739_v16 = vunpack.c.0.s8 %v738_v11  ;;  %p2954_p7 = por %p2953_p9, %p2952_p0 }
  0x79   : > { %2506 = vmatpush3.msra.mxu1 %v539_v17  ;;  %562 = vmatprep.subr.mxu0 %v535_v18  ;;  %v516_v37 = vld [vmem:[#allocation5 + $0x60] sm:$0xff]  ;;  %v518_v38 = vld [vmem:[#allocation5 + $0x70] sm:$0xff]  ;;  %v513_v40 = vld [vmem:[#allocation5 + $0x48] sm:$0xff]  ;;  %v3320_v17 = vsub.s32 %v707_v12, %v709_v13 }
  0x7a   : > { %2507 = vmatprep.subr.mxu1 %v3044_v0  ;;  %563 = vmatpush1.msra.mxu0 %v534_v19  ;;  %v514_v39 = vld [vmem:[#allocation5 + $0x50] sm:$0xff]  ;;  %v515_v41 = vld [vmem:[#allocation5 + $0x58] sm:$0xff]  ;;  %v512_v44 = vld [vmem:[#allocation5 + $0x40] sm:$0xff]  ;;  %p2955_p8 = pnand %p2954_p7, %p2948_p5 }
  0x7b   : > { %2508 = vmatpush3.msra.mxu1 %v536_v20  ;;  %564 = vmatprep.subr.mxu0 %v532_v21  ;;  %v511_v42 = vld [vmem:[#allocation5 + $0x38] sm:$0xff]  ;;  %v510_v43 = vld [vmem:[#allocation5 + $0x30] sm:$0xff]  ;;  %v508_v45 = vld [vmem:[#allocation5 + $0x20] sm:$0xff] }
  0x7c   : > { %2509 = vmatprep.subr.mxu1 %v3044_v0  ;;  %565 = vmatpush1.msra.mxu0 %v531_v22  ;;  %v507_v46 = vld [vmem:[#allocation5 + $0x18] sm:$0xff]  ;;  %v509_v47 = vld [vmem:[#allocation5 + $0x28] sm:$0xff]  ;;  %v504_v49 = vld [vmem:[#allocation5] sm:$0xff] }
  0x7d   : > { %2510 = vmatpush3.msra.mxu1 %v533_v23  ;;  %566 = vmatprep.subr.mxu0 %v529_v24  ;;  %v505_v48 = vld [vmem:[#allocation5 + $0x8] sm:$0xff]  ;;  %v506_v50 = vld [vmem:[#allocation5 + $0x10] sm:$0xff]  ;;  %v3322_v23 = vsub.s32 %v739_v16, %v709_v13 }
  0x7e   : > { %2511 = vmatprep.subr.mxu1 %v3044_v0  ;;  %567 = vmatpush1.msra.mxu0 %v528_v25  ;;  %v2383_v60 = vld [vmem:[%s3569_s1] ss:$0 sm:$0xff] }
  0x7f   : > { %2512 = vmatpush3.msra.mxu1 %v530_v26  ;;  %568 = vmatprep.subr.mxu0 %v526_v27  ;;  %v2384_v62 = vld [vmem:[%s3570_s2] ss:$0 sm:$0xff] }
  0x80   : > { %2513 = vmatprep.subr.mxu1 %v3044_v0  ;;  %569 = vmatpush1.msra.mxu0 %v525_v28 }
  0x81   : > { %2514 = vmatpush3.msra.mxu1 %v527_v29  ;;  %570 = vmatprep.subr.mxu0 %v523_v30 }
  0x82   : > { %2515 = vmatprep.subr.mxu1 %v3044_v0  ;;  %571 = vmatpush1.msra.mxu0 %v522_v31 }
  0x83   : > { %2516 = vmatpush3.msra.mxu1 %v524_v32  ;;  %572 = vmatprep.subr.mxu0 %v520_v33 }
  0x84   : > { %2517 = vmatprep.subr.mxu1 %v3044_v0  ;;  %573 = vmatpush1.msra.mxu0 %v519_v34 }
  0x85   : > { %2518 = vmatpush3.msra.mxu1 %v521_v35  ;;  %574 = vmatprep.subr.mxu0 %v517_v36 }
  0x86   : > { %2519 = vmatprep.subr.mxu1 %v3044_v0  ;;  %575 = vmatpush1.msra.mxu0 %v516_v37 }
  0x87   : > { %2520 = vmatpush3.msra.mxu1 %v518_v38  ;;  %576 = vmatprep.subr.mxu0 %v514_v39 }
  0x88   : > { %2521 = vmatprep.subr.mxu1 %v3044_v0  ;;  %577 = vmatpush1.msra.mxu0 %v513_v40 }
  0x89   : > { %2522 = vmatpush3.msra.mxu1 %v515_v41  ;;  %578 = vmatprep.subr.mxu0 %v511_v42 }
  0x8a   : > { %2523 = vmatprep.subr.mxu1 %v3044_v0  ;;  %579 = vmatpush1.msra.mxu0 %v510_v43 }
  0x8b   : > { %2524 = vmatpush3.msra.mxu1 %v512_v44  ;;  %580 = vmatprep.subr.mxu0 %v508_v45 }
  0x8c   : > { %2525 = vmatprep.subr.mxu1 %v3044_v0  ;;  %581 = vmatpush1.msra.mxu0 %v507_v46 }
  0x8d   : > { %2526 = vmatpush3.msra.mxu1 %v509_v47  ;;  %582 = vmatprep.subr.mxu0 %v505_v48 }
  0x8e   : > { %2527 = vmatprep.subr.mxu1 %v3044_v0  ;;  %583 = vmatpush1.msra.mxu0 %v504_v49 }
  0x8f   : > { %2528 = vmatpush3.msra.mxu1 %v506_v50  ;;  %2529 = vmatprep.mubr.msk.f32.mxu1 %vm3045_vm0, %v3044_v0 }
  0x90   : > { %2532 = vmatprep.subr.mxu1 %v3044_v0  ;;  %2572 = vmatprep.subr.mxu0 %v3044_v0 }
  0xf8   : > { %v476_v51 = vpop.xlane.xlu0 %475 }
  0xf9   : > { %v477_v52 = vmul.f32 0.03125, %v476_v51 }
  0xfb   : > { %v482_v54 = vmul.f32 %v477_v52, %v477_v52  ;;  %v484_v58 = vsub.f32 %v3272_v1, %v477_v52 }
  0xfc   : > { %v480_v53 = vpop.xlane.xlu0 %479 }
  0xfd   : > { %v481_v55 = vmul.f32 0.03125, %v480_v53 }
  0xff   : > { %v483_v56 = vsub.f32 %v481_v55, %v482_v54 }
 0x101   : > { %v485_v57 = vadd.f32 1e-05, %v483_v56 }
 0x103   : > { %2791 = vrsqrt.f32 %v485_v57 }
 0x110   : > { %v2792_v59 = vpop.eup %2791 }
 0x111   : > { %v487_v61 = vmul.f32 %v2792_v59, %v484_v58 }
 0x113   : > { %v495_v63 = vmul.f32 %v2383_v60, %v487_v61 }
 0x115   : > { %v503_v2 = vadd.f32 %v2384_v62, %v495_v63 }
 0x117   : > { %617 = vmatmul.mubr.f32.vlgmr.msra.gmra.mxu0 %v503_v2  ;;  %2530 = vmatmul.mubr.f32.vlgmr.msra.gmra.mxu1 %v503_v2 }
 0x118   : > { %2534 = vmatprep.mubr.msk.f32.mxu1 %vm3045_vm0, %v3044_v0  ;;  %2604 = vmatprep.mubr.msk.f32.mxu0 %vm3045_vm0, %v3044_v0 }
 0x1d7   : > { %v3307_v3 = vpop.f32.mrf.mxu0  ;;  %v3309_v4 = vpop.f32.mrf.mxu1 }
 0x1d9   : > { %v620_v5 = vpop.f32.mrf.mxu0  ;;  %v2531_v6 = vpop.f32.mrf.mxu1 }
 0x1da   : > { %846 = vrot.lane.b32.xlu0 %v620_v5, %s3046_s14  ;;  %840 = vrot.lane.b32.xlu1 %v620_v5, %s3047_s15 }
 0x1de   : > { %843 = vrot.lane.b32.xlu1 %v620_v5, %s3048_s27 }
 0x1e2   : > { %694 = vrot.lane.b32.xlu1 %v3307_v3, %s3047_s15 }
 0x1e6   : > { %697 = vrot.lane.b32.xlu1 %v3307_v3, %s3048_s27 }
 0x1ea   : > { %700 = vrot.lane.b32.xlu1 %v3307_v3, %s3046_s14 }
 0x24c   : > { %v847_v14 = vpop.permute.xlu0 %846  ;;  %v841_v15 = vpop.permute.xlu1 %840 }
 0x24d   : > { %v865_v18 = vcombine.low %v841_v15, %v847_v14  ;;  %v866_v19 = vcombine.high %v841_v15, %v847_v14 }
 0x24f   : > { %v873_v24 = vrot.slane %v865_v18, %v3320_v17  ;;  %v880_v25 = vrot.slane %v866_v19, %v3320_v17 }
 0x250   : > { %v844_v20 = vpop.permute.xlu1 %843 }
 0x251   : > { %v849_v21 = vcombine.low %v620_v5, %v844_v20  ;;  %v850_v22 = vcombine.high %v620_v5, %v844_v20 }
 0x253   : > { %v857_v26 = vrot.slane %v849_v21, %v3320_v17  ;;  %v864_v27 = vrot.slane %v850_v22, %v3320_v17 }
 0x254   : > { %v695_v28 = vpop.permute.xlu1 %694 }
 0x255   : > { %v881_v29 = vcombine.low %v857_v26, %v873_v24  ;;  %v882_v30 = vcombine.high %v857_v26, %v873_v24  ;;  %v897_v31 = vcombine.low %v864_v27, %v880_v25  ;;  %v898_v32 = vcombine.high %v864_v27, %v880_v25 }
 0x257   : > { %v889_v33 = vrot.slane %v881_v29, %v3322_v23  ;;  %v896_v34 = vrot.slane %v882_v30, %v3322_v23  ;;  %v905_v35 = vrot.slane %v897_v31, %v3322_v23  ;;  %v912_v36 = vrot.slane %v898_v32, %v3322_v23 }
 0x258   : > { %v698_v37 = vpop.permute.xlu1 %697 }
 0x259   : > { %v917_v38 = vcombine.low %v889_v33, %v896_v34  ;;  %v2387_v39 = vcombine.high %v889_v33, %v896_v34  ;;  %v933_v40 = vcombine.low %v905_v35, %v912_v36  ;;  %v2388_v41 = vcombine.high %v905_v35, %v912_v36 }
 0x25a   : > { %v703_v46 = vcombine.low %v3307_v3, %v698_v37  ;;  %v704_v47 = vcombine.high %v3307_v3, %v698_v37 }
 0x25b   : > { %v924_v42 = vrot.slane %v917_v38, %v3320_v17  ;;  %v932_v43 = vrot.slane %v2387_v39, %v3320_v17  ;;  %v940_v44 = vrot.slane %v933_v40, %v3320_v17  ;;  %v948_v45 = vrot.slane %v2388_v41, %v3320_v17 }
 0x25c   : > { %v701_v48 = vpop.permute.xlu1 %700  ;;  %v711_v55 = vrot.slane %v703_v46, %v3320_v17  ;;  %v718_v56 = vrot.slane %v704_v47, %v3320_v17 }
 0x25d   : > { %v949_v49 = vcombine.low %v924_v42, %v932_v43  ;;  %v965_v50 = vcombine.low %v940_v44, %v948_v45  ;;  %v719_v51 = vcombine.low %v695_v28, %v701_v48  ;;  %v720_v52 = vcombine.high %v695_v28, %v701_v48 }
 0x25e   : > { %v950_v18 = vcombine.high %v924_v42, %v932_v43  ;;  %v966_v19 = vcombine.high %v940_v44, %v948_v45 }
 0x25f   : > { %v957_v53 = vrot.slane %v949_v49, %v3322_v23  ;;  %v973_v54 = vrot.slane %v965_v50, %v3322_v23  ;;  %v727_v57 = vrot.slane %v719_v51, %v3320_v17  ;;  %v734_v58 = vrot.slane %v720_v52, %v3320_v17 }
 0x260   : > { %v964_v27 = vrot.slane %v950_v18, %v3322_v23  ;;  %v980_v28 = vrot.slane %v966_v19, %v3322_v23 }
 0x261   : > { %v981_v59 = vcombine.low %v957_v53, %v973_v54  ;;  %v735_v60 = vcombine.low %v711_v55, %v727_v57  ;;  %v736_v61 = vcombine.high %v711_v55, %v727_v57  ;;  %v751_v62 = vcombine.low %v718_v56, %v734_v58 }
 0x262   : > { %v752_v63 = vcombine.high %v718_v56, %v734_v58  ;;  %v982_v26 = vcombine.high %v957_v53, %v973_v54  ;;  %v983_v32 = vcombine.low %v964_v27, %v980_v28  ;;  %v984_v34 = vcombine.high %v964_v27, %v980_v28 }
 0x263   : > { %2533 = vmatpush3.xpose.msk.msra.mxu1 %vm1131_vm1, %v981_v59  ;;  %v743_v2 = vrot.slane %v735_v60, %v3322_v23  ;;  %v750_v3 = vrot.slane %v736_v61, %v3322_v23  ;;  %v759_v5 = vrot.slane %v751_v62, %v3322_v23 }
 0x264   : > { %v766_v6 = vrot.slane %v752_v63, %v3322_v23  ;;  %2537 = vmatprep.subr.mxu1 %v3044_v0 }
 0x265   : > { %v771_v7 = vcombine.low %v743_v2, %v750_v3  ;;  %v2385_v8 = vcombine.high %v743_v2, %v750_v3 }
 0x266   : > { %v787_v9 = vcombine.low %v759_v5, %v766_v6  ;;  %v2386_v10 = vcombine.high %v759_v5, %v766_v6 }
 0x267   : > { %v778_v11 = vrot.slane %v771_v7, %v3320_v17  ;;  %v786_v12 = vrot.slane %v2385_v8, %v3320_v17 }
 0x268   : > { %v794_v13 = vrot.slane %v787_v9, %v3320_v17  ;;  %v802_v14 = vrot.slane %v2386_v10, %v3320_v17 }
 0x269   : > { %v803_v15 = vcombine.low %v778_v11, %v786_v12  ;;  %v804_v22 = vcombine.high %v778_v11, %v786_v12 }
 0x26a   : > { %v819_v16 = vcombine.low %v794_v13, %v802_v14  ;;  %v820_v24 = vcombine.high %v794_v13, %v802_v14 }
 0x26b   : > { %v811_v20 = vrot.slane %v803_v15, %v3322_v23  ;;  %v818_v30 = vrot.slane %v804_v22, %v3322_v23 }
 0x26c   : > { %v827_v21 = vrot.slane %v819_v16, %v3322_v23  ;;  %v834_v31 = vrot.slane %v820_v24, %v3322_v23 }
 0x26e   : > { %v835_v25 = vcombine.low %v811_v20, %v827_v21  ;;  %v836_v29 = vcombine.high %v811_v20, %v827_v21  ;;  %v837_v33 = vcombine.low %v818_v30, %v834_v31  ;;  %v838_v35 = vcombine.high %v818_v30, %v834_v31 }
 0x270   : > { %2535 = vmatmul.mubr.msk.f32.vlgmr.msra.gmra.mxu1 %vm1131_vm1, %v835_v25 }
 0x271   : > { %2538 = vmatpush3.xpose.msk.msra.mxu1 %vm1131_vm1, %v982_v26  ;;  %2539 = vmatprep.mubr.msk.f32.mxu1 %vm3045_vm0, %v3044_v0 }
 0x272   : > { %2542 = vmatprep.subr.mxu1 %v3044_v0 }
 0x274   : > { %2540 = vmatmul.mubr.msk.f32.vlgmr.msra.gmra.mxu1 %vm1131_vm1, %v836_v29 }
 0x275   : > { %2543 = vmatpush3.xpose.msk.msra.mxu1 %vm1131_vm1, %v983_v32  ;;  %2544 = vmatprep.mubr.msk.f32.mxu1 %vm3045_vm0, %v3044_v0 }
 0x276   : > { %2547 = vmatprep.subr.mxu1 %v3044_v0 }
 0x278   : > { %2545 = vmatmul.mubr.msk.f32.vlgmr.msra.gmra.mxu1 %vm1131_vm1, %v837_v33 }
 0x279   : > { %2548 = vmatpush3.xpose.msk.msra.mxu1 %vm1131_vm1, %v984_v34  ;;  %2549 = vmatprep.mubr.msk.f32.mxu1 %vm3045_vm0, %v3044_v0 }
 0x27a   : > { %2552 = vmatprep.subr.mxu1 %v3044_v0 }
 0x27c   : > { %2550 = vmatmul.mubr.msk.f32.vlgmr.msra.gmra.mxu1 %vm1131_vm1, %v838_v35 }
 0x27d   : > { %2554 = vmatprep.mubr.msk.f32.mxu1 %vm3045_vm0, %v3044_v0 }
 0x330   : > { %v1204_v36 = vpop.f32.mrf.mxu1 }
 0x331   : > { %v1437_v37 = vsel %vm1436_vm2, %v1204_v36, -inf }
 0x332   : > { %1438 = vmax.xlane.f32.xlu1 %v1437_v37  ;;  %v2536_v38 = vpop.f32.mrf.mxu1 }
 0x334   : > { %v1280_v39 = vpop.f32.mrf.mxu1 }
 0x335   : > { %v1440_v40 = vsel %vm1436_vm2, %v1280_v39, -inf }
 0x336   : > { %1441 = vmax.xlane.f32.xlu0 %v1440_v40  ;;  %v2541_v41 = vpop.f32.mrf.mxu1 }
 0x338   : > { %v1356_v42 = vpop.f32.mrf.mxu1 }
 0x339   : > { %v1443_v43 = vsel %vm1436_vm2, %v1356_v42, -inf }
 0x33a   : > { %1444 = vmax.xlane.f32.xlu1 %v1443_v43  ;;  %v2546_v44 = vpop.f32.mrf.mxu1 }
 0x33c   : > { %v1432_v45 = vpop.f32.mrf.mxu1 }
 0x33d   : > { %v1446_v46 = vsel %vm1436_vm2, %v1432_v45, -inf }
 0x33e   : > { %1447 = vmax.xlane.f32.xlu1 %v1446_v46  ;;  %v2551_v47 = vpop.f32.mrf.mxu1 }
 0x34f   : > { %986 = vrot.lane.b32.xlu1 %v3309_v4, %s3047_s15 }
 0x3bb   : > { %v1439_v48 = vpop.xlane.xlu1 %1438 }
 0x3bc   : > { %v1449_v49 = vsub.f32 %v1204_v36, %v1439_v48 }
 0x3be   : > { %v1453_v50 = vmul.f32 1.442695, %v1449_v49 }
 0x3bf   : > { %v1442_v51 = vpop.xlane.xlu0 %1441 }
 0x3c0   : > { %2793 = vpow2.f32 %v1453_v50  ;;  %v1450_v52 = vsub.f32 %v1280_v39, %v1442_v51 }
 0x3c2   : > { %v1455_v53 = vmul.f32 1.442695, %v1450_v52 }
 0x3c3   : > { %v1445_v54 = vpop.xlane.xlu1 %1444 }
 0x3c4   : > { %2795 = vpow2.f32 %v1455_v53  ;;  %v1451_v55 = vsub.f32 %v1356_v42, %v1445_v54 }
 0x3c6   : > { %v1457_v56 = vmul.f32 1.442695, %v1451_v55 }
 0x3c7   : > { %v1448_v63 = vpop.xlane.xlu1 %1447 }
 0x3c8   : > { %2797 = vpow2.f32 %v1457_v56  ;;  %v1452_v2 = vsub.f32 %v1432_v45, %v1448_v63  ;;  %v1937_v63 = vld [vmem:[#allocation7 + $0x58] sm:$0xff] }
 0x3ca   : > { %v1459_v3 = vmul.f32 1.442695, %v1452_v2  ;;  %v1936_v2 = vld [vmem:[#allocation7 + $0x50] sm:$0xff] }
 0x3cb   : > { %v987_v7 = vpop.permute.xlu1 %986 }
 0x3cc   : > { %2799 = vpow2.f32 %v1459_v3  ;;  %v1935_v3 = vld [vmem:[#allocation7 + $0x48] sm:$0xff] }
 0x3cd   : > { %v2794_v57 = vpop.eup %2793 }
 0x3ce   : > { %v1461_v58 = vsel %vm1436_vm2, %v2794_v57, 0.0 }
 0x3cf   : > { %1462 = vadd.xlane.f32.xlu0 %v1461_v58 }
 0x3d1   : > { %v3385_v59 = vpop.eup %2795 }
 0x3d2   : > { %v1464_v60 = vsel %vm1436_vm2, %v3385_v59, 0.0 }
 0x3d3   : > { %1465 = vadd.xlane.f32.xlu1 %v1464_v60  ;;  %v1940_v60 = vld [vmem:[#allocation7 + $0x70] sm:$0xff] }
 0x3d5   : > { %v3389_v61 = vpop.eup %2797 }
 0x3d6   : > { %v1467_v62 = vsel %vm1436_vm2, %v3389_v61, 0.0 }
 0x3d7   : > { %1468 = vadd.xlane.f32.xlu0 %v1467_v62  ;;  %v1938_v62 = vld [vmem:[#allocation7 + $0x60] sm:$0xff] }
 0x3d9   : > { %v3397_v5 = vpop.eup %2799 }
 0x3da   : > { %v1470_v6 = vsel %vm1436_vm2, %v3397_v5, 0.0 }
 0x3e4   : > { %992 = vrot.lane.b32.xlu1 %v3309_v4, %s3046_s14 }
 0x3ed   : > { %989 = vrot.lane.b32.xlu0 %v3309_v4, %s3048_s27 }
 0x408   : > { %1471 = vadd.xlane.f32.xlu1 %v1470_v6  ;;  %v1933_v6 = vld [vmem:[#allocation7 + $0x38] sm:$0xff] }
 0x458   : > { %v1463_v8 = vpop.xlane.xlu0 %1462 }
 0x459   : > { %2801 = vrcp.f32 %v1463_v8  ;;  %v1931_v8 = vld [vmem:[#allocation7 + $0x28] sm:$0xff] }
 0x45c   : > { %v1466_v9 = vpop.xlane.xlu1 %1465 }
 0x45d   : > { %2803 = vrcp.f32 %v1466_v9 }
 0x460   : > { %v1469_v10 = vpop.xlane.xlu0 %1468  ;;  %v993_v11 = vpop.permute.xlu1 %992 }
 0x461   : > { %v1011_v12 = vcombine.low %v987_v7, %v993_v11  ;;  %v1012_v13 = vcombine.high %v987_v7, %v993_v11  ;;  %2805 = vrcp.f32 %v1469_v10  ;;  %v1932_v7 = vld [vmem:[#allocation7 + $0x30] sm:$0xff] }
 0x463   : > { %v1019_v18 = vrot.slane %v1011_v12, %v3320_v17  ;;  %v1026_v19 = vrot.slane %v1012_v13, %v3320_v17 }
 0x464   : > { %v990_v14 = vpop.permute.xlu0 %989 }
 0x465   : > { %v995_v15 = vcombine.low %v3309_v4, %v990_v14  ;;  %v996_v16 = vcombine.high %v3309_v4, %v990_v14 }
 0x466   : > { %v2802_v40 = vpop.eup %2801 }
 0x467   : > { %v1003_v20 = vrot.slane %v995_v15, %v3320_v17  ;;  %v1010_v21 = vrot.slane %v996_v16, %v3320_v17  ;;  %v1477_v46 = vmul.f32 %v2802_v40, %v2794_v57  ;;  %v1928_v40 = vld [vmem:[#allocation7 + $0x10] sm:$0xff] }
 0x469   : > { %v1027_v22 = vcombine.low %v1003_v20, %v1019_v18  ;;  %v1028_v24 = vcombine.high %v1003_v20, %v1019_v18  ;;  %v1043_v25 = vcombine.low %v1010_v21, %v1026_v19  ;;  %v1044_v26 = vcombine.high %v1010_v21, %v1026_v19 }
 0x46a   : > { %v2804_v47 = vpop.eup %2803 }
 0x46b   : > { %v1035_v27 = vrot.slane %v1027_v22, %v3322_v23  ;;  %v1042_v28 = vrot.slane %v1028_v24, %v3322_v23  ;;  %v1051_v4 = vrot.slane %v1043_v25, %v3322_v23  ;;  %v1058_v29 = vrot.slane %v1044_v26, %v3322_v23 }
 0x46c   : > { %v1478_v51 = vmul.f32 %v2804_v47, %v3385_v59  ;;  %v1941_v59 = vld [vmem:[#allocation7 + $0x78] sm:$0xff] }
 0x46d   : > { %v1063_v30 = vcombine.low %v1035_v27, %v1042_v28  ;;  %v2389_v31 = vcombine.high %v1035_v27, %v1042_v28  ;;  %v1079_v32 = vcombine.low %v1051_v4, %v1058_v29  ;;  %v2390_v33 = vcombine.high %v1051_v4, %v1058_v29  ;;  %2573 = vmatpush3.msra.mxu0 %v1941_v59 }
 0x46e   : > { %v2806_v52 = vpop.eup %2805  ;;  %2574 = vmatprep.subr.mxu0 %v3044_v0 }
 0x46f   : > { %v1070_v34 = vrot.slane %v1063_v30, %v3320_v17  ;;  %v1078_v35 = vrot.slane %v2389_v31, %v3320_v17  ;;  %v1086_v36 = vrot.slane %v1079_v32, %v3320_v17  ;;  %v1094_v37 = vrot.slane %v2390_v33, %v3320_v17  ;;  %2575 = vmatpush3.msra.mxu0 %v1940_v60  ;;  %v1930_v30 = vld [vmem:[#allocation7 + $0x20] sm:$0xff]  ;;  %v1929_v31 = vld [vmem:[#allocation7 + $0x18] sm:$0xff] }
 0x470   : > { %v1479_v54 = vmul.f32 %v2806_v52, %v3389_v61  ;;  %v1939_v61 = vld [vmem:[#allocation7 + $0x68] sm:$0xff]  ;;  %2576 = vmatprep.subr.mxu0 %v3044_v0 }
 0x471   : > { %v1095_v38 = vcombine.low %v1070_v34, %v1078_v35  ;;  %v1111_v39 = vcombine.low %v1086_v36, %v1094_v37  ;;  %v1096_v43 = vcombine.high %v1070_v34, %v1078_v35  ;;  %v1112_v44 = vcombine.high %v1086_v36, %v1094_v37  ;;  %2577 = vmatpush3.msra.mxu0 %v1939_v61 }
 0x472   : > { %2578 = vmatprep.subr.mxu0 %v3044_v0 }
 0x473   : > { %v1103_v41 = vrot.slane %v1095_v38, %v3322_v23  ;;  %v1119_v42 = vrot.slane %v1111_v39, %v3322_v23  ;;  %v1110_v49 = vrot.slane %v1096_v43, %v3322_v23  ;;  %v1126_v50 = vrot.slane %v1112_v44, %v3322_v23  ;;  %2579 = vmatpush3.msra.mxu0 %v1938_v62 }
 0x474   : > { %2580 = vmatprep.subr.mxu0 %v3044_v0 }
 0x475   : > { %v1127_v45 = vcombine.low %v1103_v41, %v1119_v42  ;;  %v1128_v48 = vcombine.high %v1103_v41, %v1119_v42  ;;  %v1129_v53 = vcombine.low %v1110_v49, %v1126_v50  ;;  %v1130_v55 = vcombine.high %v1110_v49, %v1126_v50  ;;  %2581 = vmatpush3.msra.mxu0 %v1937_v63  ;;  %v1927_v41 = vld [vmem:[#allocation7 + $0x8] sm:$0xff]  ;;  %v1926_v50 = vld [vmem:[#allocation7] sm:$0xff] }
 0x476   : > { %2582 = vmatprep.subr.mxu0 %v3044_v0 }
 0x477   : > { %2553 = vmatpush3.msra.mxu1 %v1127_v45  ;;  %2583 = vmatpush3.msra.mxu0 %v1936_v2  ;;  %v2055_v2 = vld [vmem:[#allocation8 + $0x70] sm:$0xff] }
 0x478   : > { %2555 = vmatmul.mubr.msk.f32.vlgmr.msra.gmra.mxu1 %vm1436_vm2, %v1477_v46  ;;  %2557 = vmatprep.subr.mxu1 %v3044_v0 }
 0x479   : > { %2558 = vmatpush3.msra.mxu1 %v1128_v48  ;;  %2559 = vmatprep.mubr.msk.f32.mxu1 %vm3045_vm0, %v3044_v0 }
 0x47a   : > { %2562 = vmatprep.subr.mxu1 %v3044_v0  ;;  %2584 = vmatprep.subr.mxu0 %v3044_v0 }
 0x47b   : > { %2585 = vmatpush3.msra.mxu0 %v1935_v3 }
 0x47c   : > { %2560 = vmatmul.mubr.msk.f32.vlgmr.msra.gmra.mxu1 %vm1436_vm2, %v1478_v51  ;;  %2586 = vmatprep.subr.mxu0 %v3044_v0 }
 0x47d   : > { %2563 = vmatpush3.msra.mxu1 %v1129_v53  ;;  %2564 = vmatprep.mubr.msk.f32.mxu1 %vm3045_vm0, %v3044_v0 }
 0x47e   : > { %2567 = vmatprep.subr.mxu1 %v3044_v0 }
 0x480   : > { %2565 = vmatmul.mubr.msk.f32.vlgmr.msra.gmra.mxu1 %vm1436_vm2, %v1479_v54 }
 0x481   : > { %2568 = vmatpush3.msra.mxu1 %v1130_v55  ;;  %2569 = vmatprep.mubr.msk.f32.mxu1 %vm3045_vm0, %v3044_v0 }
 0x482   : > { %2607 = vmatprep.subr.mxu1 %v3044_v0 }
 0x491   : > { %v1472_v56 = vpop.xlane.xlu1 %1471 }
 0x492   : > { %2807 = vrcp.f32 %v1472_v56 }
 0x49f   : > { %v2808_v57 = vpop.eup %2807 }
 0x4a0   : > { %v1480_v58 = vmul.f32 %v2808_v57, %v3397_v5  ;;  %v1934_v5 = vld [vmem:[#allocation7 + $0x40] sm:$0xff] }
 0x4a1   : > { %2587 = vmatpush3.msra.mxu0 %v1934_v5 }
 0x4a2   : > { %2570 = vmatmul.mubr.msk.f32.vlgmr.msra.gmra.mxu1 %vm1436_vm2, %v1480_v58  ;;  %2588 = vmatprep.subr.mxu0 %v3044_v0 }
 0x4a3   : > { %2639 = vmatprep.mubr.msk.f32.mxu1 %vm3045_vm0, %v3044_v0  ;;  %2589 = vmatpush3.msra.mxu0 %v1933_v6 }
 0x4a4   : > { %2590 = vmatprep.subr.mxu0 %v3044_v0 }
 0x4a5   : > { %2591 = vmatpush3.msra.mxu0 %v1932_v7 }
 0x4a6   : > { %2592 = vmatprep.subr.mxu0 %v3044_v0 }
 0x4a7   : > { %2593 = vmatpush3.msra.mxu0 %v1931_v8  ;;  %v2054_v8 = vld [vmem:[#allocation8 + $0x68] sm:$0xff] }
 0x4a8   : > { %2594 = vmatprep.subr.mxu0 %v3044_v0 }
 0x4a9   : > { %2595 = vmatpush3.msra.mxu0 %v1930_v30 }
 0x4aa   : > { %2596 = vmatprep.subr.mxu0 %v3044_v0 }
 0x4ab   : > { %2597 = vmatpush3.msra.mxu0 %v1929_v31 }
 0x4ac   : > { %2598 = vmatprep.subr.mxu0 %v3044_v0 }
 0x4ad   : > { %2599 = vmatpush3.msra.mxu0 %v1928_v40  ;;  %v2150_v40 = vld [vmem:[#allocation10 + $0x58] sm:$0xff] }
 0x4ae   : > { %2600 = vmatprep.subr.mxu0 %v3044_v0 }
 0x4af   : > { %2601 = vmatpush3.msra.mxu0 %v1927_v41  ;;  %v2149_v41 = vld [vmem:[#allocation10 + $0x50] sm:$0xff] }
 0x4b0   : > { %2602 = vmatprep.subr.mxu0 %v3044_v0 }
 0x4b1   : > { %2603 = vmatpush3.msra.mxu0 %v1926_v50  ;;  %v2140_v50 = vld [vmem:[#allocation10 + $0x8] sm:$0xff] }
 0x4b2   : > { %2642 = vmatprep.subr.mxu0 %v3044_v0 }
 0x538   : > { %v1550_v9 = vpop.f32.mrf.mxu1 }
 0x53a   : > { %v2556_v10 = vpop.f32.mrf.mxu1 }
 0x53b   : > { %v2052_v10 = vld [vmem:[#allocation8 + $0x58] sm:$0xff] }
 0x53c   : > { %v1623_v11 = vpop.f32.mrf.mxu1 }
 0x53e   : > { %v2561_v12 = vpop.f32.mrf.mxu1 }
 0x53f   : > { %v2049_v12 = vld [vmem:[#allocation8 + $0x40] sm:$0xff] }
 0x540   : > { %v1696_v13 = vpop.f32.mrf.mxu1 }
 0x541   : > { %v1773_v15 = vcombine.low %v1550_v9, %v1696_v13  ;;  %v1774_v16 = vcombine.high %v1550_v9, %v1696_v13  ;;  %v2053_v9 = vld [vmem:[#allocation8 + $0x60] sm:$0xff]  ;;  %v2048_v13 = vld [vmem:[#allocation8 + $0x38] sm:$0xff] }
 0x542   : > { %v2566_v14 = vpop.f32.mrf.mxu1 }
 0x543   : > { %v1781_v22 = vrot.slane %v1773_v15, %v3320_v17  ;;  %v1788_v24 = vrot.slane %v1774_v16, %v3320_v17  ;;  %v2047_v14 = vld [vmem:[#allocation8 + $0x30] sm:$0xff]  ;;  %v2046_v15 = vld [vmem:[#allocation8 + $0x28] sm:$0xff]  ;;  %v2045_v16 = vld [vmem:[#allocation8 + $0x20] sm:$0xff] }
 0x562   : > { %v1769_v18 = vpop.f32.mrf.mxu1 }
 0x563   : > { %v1789_v19 = vcombine.low %v1623_v11, %v1769_v18  ;;  %v1790_v20 = vcombine.high %v1623_v11, %v1769_v18  ;;  %v2050_v11 = vld [vmem:[#allocation8 + $0x48] sm:$0xff]  ;;  %v2044_v18 = vld [vmem:[#allocation8 + $0x18] sm:$0xff] }
 0x564   : > { %v2571_v21 = vpop.f32.mrf.mxu1 }
 0x565   : > { %v1797_v25 = vrot.slane %v1789_v19, %v3320_v17  ;;  %v1804_v26 = vrot.slane %v1790_v20, %v3320_v17  ;;  %v2043_v19 = vld [vmem:[#allocation8 + $0x10] sm:$0xff]  ;;  %v2042_v20 = vld [vmem:[#allocation8 + $0x8] sm:$0xff]  ;;  %v2041_v21 = vld [vmem:[#allocation8] sm:$0xff] }
 0x567   : > { %v1805_v27 = vcombine.low %v1781_v22, %v1797_v25  ;;  %v1806_v28 = vcombine.high %v1781_v22, %v1797_v25  ;;  %v1821_v4 = vcombine.low %v1788_v24, %v1804_v26  ;;  %v1822_v29 = vcombine.high %v1788_v24, %v1804_v26  ;;  %v2154_v22 = vld [vmem:[#allocation10 + $0x78] sm:$0xff]  ;;  %v2153_v24 = vld [vmem:[#allocation10 + $0x70] sm:$0xff]  ;;  %v2152_v25 = vld [vmem:[#allocation10 + $0x68] sm:$0xff] }
 0x568   : > { %v2151_v26 = vld [vmem:[#allocation10 + $0x60] sm:$0xff] }
 0x569   : > { %v1813_v32 = vrot.slane %v1805_v27, %v3322_v23  ;;  %v1820_v33 = vrot.slane %v1806_v28, %v3322_v23  ;;  %v1829_v34 = vrot.slane %v1821_v4, %v3322_v23  ;;  %v1836_v35 = vrot.slane %v1822_v29, %v3322_v23 }
 0x56b   : > { %v1841_v36 = vcombine.low %v1813_v32, %v1820_v33  ;;  %v2403_v37 = vcombine.high %v1813_v32, %v1820_v33  ;;  %v1857_v38 = vcombine.low %v1829_v34, %v1836_v35  ;;  %v2404_v39 = vcombine.high %v1829_v34, %v1836_v35  ;;  %v2405_v35 = vld [vmem:[%s3573_s5] ss:$0 sm:$0xff] }
 0x56d   : > { %v1848_v42 = vrot.slane %v1841_v36, %v3320_v17  ;;  %v1856_v43 = vrot.slane %v2403_v37, %v3320_v17  ;;  %v1864_v44 = vrot.slane %v1857_v38, %v3320_v17  ;;  %v1872_v45 = vrot.slane %v2404_v39, %v3320_v17  ;;  %v2406_v37 = vld [vmem:[%s3574_s6] ss:$0 sm:$0xff] }
 0x56f   : > { %v1873_v46 = vcombine.low %v1848_v42, %v1856_v43  ;;  %v1889_v47 = vcombine.low %v1864_v44, %v1872_v45  ;;  %v1874_v48 = vcombine.high %v1848_v42, %v1856_v43  ;;  %v1890_v49 = vcombine.high %v1864_v44, %v1872_v45  ;;  %v2148_v42 = vld [vmem:[#allocation10 + $0x48] sm:$0xff]  ;;  %v2147_v43 = vld [vmem:[#allocation10 + $0x40] sm:$0xff]  ;;  %v2146_v44 = vld [vmem:[#allocation10 + $0x38] sm:$0xff] }
 0x570   : > { %v2145_v45 = vld [vmem:[#allocation10 + $0x30] sm:$0xff] }
 0x571   : > { %v1881_v51 = vrot.slane %v1873_v46, %v3322_v23  ;;  %v1897_v52 = vrot.slane %v1889_v47, %v3322_v23  ;;  %v1888_v17 = vrot.slane %v1874_v48, %v3322_v23  ;;  %v1904_v54 = vrot.slane %v1890_v49, %v3322_v23  ;;  %v2056_v23 = vld [vmem:[#allocation8 + $0x78] sm:$0xff]  ;;  %v2144_v46 = vld [vmem:[#allocation10 + $0x28] sm:$0xff]  ;;  %v2143_v47 = vld [vmem:[#allocation10 + $0x20] sm:$0xff] }
 0x572   : > { %2608 = vmatpush3.msra.mxu1 %v2056_v23  ;;  %v2142_v48 = vld [vmem:[#allocation10 + $0x18] sm:$0xff]  ;;  %v2141_v49 = vld [vmem:[#allocation10 + $0x10] sm:$0xff] }
 0x573   : > { %v1906_v53 = vcombine.high %v1881_v51, %v1897_v52  ;;  %v1905_v55 = vcombine.low %v1881_v51, %v1897_v52  ;;  %v1907_v56 = vcombine.low %v1888_v17, %v1904_v54  ;;  %v1908_v57 = vcombine.high %v1888_v17, %v1904_v54  ;;  %2609 = vmatprep.subr.mxu1 %v3044_v0  ;;  %v2139_v51 = vld [vmem:[#allocation10] sm:$0xff]  ;;  %v2407_v52 = vld [vmem:[%s3576_s8] ss:$0 sm:$0xff] }
 0x574   : > { %2610 = vmatpush3.msra.mxu1 %v2055_v2 }
 0x575   : > { %1910 = vrot.lane.b32.xlu0 %v1906_v53, %s3046_s14  ;;  %2611 = vmatprep.subr.mxu1 %v3044_v0 }
 0x576   : > { %2612 = vmatpush3.msra.mxu1 %v2054_v8 }
 0x577   : > { %2613 = vmatprep.subr.mxu1 %v3044_v0 }
 0x578   : > { %2614 = vmatpush3.msra.mxu1 %v2053_v9 }
 0x579   : > { %1914 = vrot.lane.b32.xlu0 %v1907_v56, %s3048_s27  ;;  %2615 = vmatprep.subr.mxu1 %v3044_v0 }
 0x57a   : > { %2616 = vmatpush3.msra.mxu1 %v2052_v10 }
 0x57b   : > { %2617 = vmatprep.subr.mxu1 %v3044_v0 }
 0x57d   : > { %1918 = vrot.lane.b32.xlu0 %v1908_v57, %s3047_s15  ;;  %s3605_s15 = sld [smem:[#allocation23_spill]] }
 0x583   : > { %s2247_s27 = scalar_lea.hbm %s3605_s15, %s2410_s4 }
 0x5e7   : > { %v1911_v58 = vpop.permute.xlu0 %1910 }
 0x5e8   : > { %v1921_v60 = vsel %vm1131_vm1, %v1905_v55, %v1911_v58 }
 0x5eb   : > { %v1915_v59 = vpop.permute.xlu0 %1914 }
 0x5ec   : > { %v1923_v61 = vsel %vm1922_vm3, %v1921_v60, %v1915_v59 }
 0x5ef   : > { %v1919_v62 = vpop.permute.xlu0 %1918 }
 0x5f0   : > { %v1925_v63 = vsel %vm1924_vm4, %v1923_v61, %v1919_v62 }
 0x5f1   : > { %2605 = vmatmul.mubr.f32.vlgmr.msra.gmra.mxu0 %v1925_v63 }
 0x5f2   : > { %2674 = vmatprep.mubr.msk.f32.mxu0 %vm3045_vm0, %v3044_v0  ;;  %2643 = vmatpush3.msra.mxu0 %v2154_v22 }
 0x5f3   : > { %2644 = vmatprep.subr.mxu0 %v3044_v0 }
 0x5f4   : > { %2645 = vmatpush3.msra.mxu0 %v2153_v24 }
 0x5f5   : > { %2646 = vmatprep.subr.mxu0 %v3044_v0 }
 0x5f6   : > { %2647 = vmatpush3.msra.mxu0 %v2152_v25 }
 0x5f7   : > { %2648 = vmatprep.subr.mxu0 %v3044_v0 }
 0x5f8   : > { %2649 = vmatpush3.msra.mxu0 %v2151_v26 }
 0x5f9   : > { %2650 = vmatprep.subr.mxu0 %v3044_v0 }
 0x5fa   : > { %2651 = vmatpush3.msra.mxu0 %v2150_v40 }
 0x5fb   : > { %2652 = vmatprep.subr.mxu0 %v3044_v0 }
 0x5fc   : > { %2653 = vmatpush3.msra.mxu0 %v2149_v41 }
 0x5fd   : > { %2654 = vmatprep.subr.mxu0 %v3044_v0 }
 0x5fe   : > { %2655 = vmatpush3.msra.mxu0 %v2148_v42 }
 0x5ff   : > { %2656 = vmatprep.subr.mxu0 %v3044_v0 }
 0x600   : > { %2657 = vmatpush3.msra.mxu0 %v2147_v43 }
 0x601   : > { %2658 = vmatprep.subr.mxu0 %v3044_v0 }
 0x602   : > { %2659 = vmatpush3.msra.mxu0 %v2146_v44 }
 0x603   : > { %2660 = vmatprep.subr.mxu0 %v3044_v0 }
 0x604   : > { %2661 = vmatpush3.msra.mxu0 %v2145_v45 }
 0x605   : > { %2662 = vmatprep.subr.mxu0 %v3044_v0 }
 0x606   : > { %2663 = vmatpush3.msra.mxu0 %v2144_v46 }
 0x607   : > { %2664 = vmatprep.subr.mxu0 %v3044_v0 }
 0x608   : > { %2665 = vmatpush3.msra.mxu0 %v2143_v47 }
 0x609   : > { %2666 = vmatprep.subr.mxu0 %v3044_v0 }
 0x60a   : > { %2667 = vmatpush3.msra.mxu0 %v2142_v48 }
 0x60b   : > { %2668 = vmatprep.subr.mxu0 %v3044_v0 }
 0x60c   : > { %2669 = vmatpush3.msra.mxu0 %v2141_v49 }
 0x60d   : > { %2670 = vmatprep.subr.mxu0 %v3044_v0 }
 0x60e   : > { %2671 = vmatpush3.msra.mxu0 %v2140_v50 }
 0x60f   : > { %2672 = vmatprep.subr.mxu0 %v3044_v0 }
 0x610   : > { %2673 = vmatpush3.msra.mxu0 %v2139_v51 }
 0x6b1   : > { %v2008_v3 = vpop.f32.mrf.mxu0 }
 0x6b2   : > { %v3479_v5 = vadd.f32 %v2008_v3, %v3272_v1  ;;  %v2051_v1 = vld [vmem:[#allocation8 + $0x50] sm:$0xff] }
 0x6b3   : > { %v2606_v6 = vpop.f32.mrf.mxu0  ;;  %2618 = vmatpush3.msra.mxu1 %v2051_v1 }
 0x6b4   : > { %2012 = vadd.xlane.f32.xlu0 %v3479_v5  ;;  %v2015_v7 = vmul.f32 %v3479_v5, %v3479_v5  ;;  %2619 = vmatprep.subr.mxu1 %v3044_v0 }
 0x6b5   : > { %2620 = vmatpush3.msra.mxu1 %v2050_v11 }
 0x6b6   : > { %2016 = vadd.xlane.f32.xlu1 %v2015_v7  ;;  %2621 = vmatprep.subr.mxu1 %v3044_v0 }
 0x6b7   : > { %2622 = vmatpush3.msra.mxu1 %v2049_v12 }
 0x6b8   : > { %2623 = vmatprep.subr.mxu1 %v3044_v0 }
 0x6b9   : > { %2624 = vmatpush3.msra.mxu1 %v2048_v13 }
 0x6ba   : > { %2625 = vmatprep.subr.mxu1 %v3044_v0 }
 0x6bb   : > { %2626 = vmatpush3.msra.mxu1 %v2047_v14 }
 0x6bc   : > { %2627 = vmatprep.subr.mxu1 %v3044_v0 }
 0x6bd   : > { %2628 = vmatpush3.msra.mxu1 %v2046_v15 }
 0x6be   : > { %2629 = vmatprep.subr.mxu1 %v3044_v0 }
 0x6bf   : > { %2630 = vmatpush3.msra.mxu1 %v2045_v16 }
 0x6c0   : > { %2631 = vmatprep.subr.mxu1 %v3044_v0 }
 0x6c1   : > { %2632 = vmatpush3.msra.mxu1 %v2044_v18 }
 0x6c2   : > { %2633 = vmatprep.subr.mxu1 %v3044_v0 }
 0x6c3   : > { %2634 = vmatpush3.msra.mxu1 %v2043_v19 }
 0x6c4   : > { %2635 = vmatprep.subr.mxu1 %v3044_v0 }
 0x6c5   : > { %2636 = vmatpush3.msra.mxu1 %v2042_v20 }
 0x6c6   : > { %2637 = vmatprep.subr.mxu1 %v3044_v0  ;;  %v2408_v0 = vld [vmem:[%s3578_s10] ss:$0 sm:$0xff] }
 0x6c7   : > { %2638 = vmatpush3.msra.mxu1 %v2041_v21 }
 0x73d   : > { %v2013_v27 = vpop.xlane.xlu0 %2012 }
 0x73e   : > { %v2014_v28 = vmul.f32 0.03125, %v2013_v27 }
 0x73f   : > { %v2017_v4 = vpop.xlane.xlu1 %2016 }
 0x740   : > { %v2019_v29 = vmul.f32 %v2014_v28, %v2014_v28  ;;  %v2018_v30 = vmul.f32 0.03125, %v2017_v4  ;;  %v2021_v33 = vsub.f32 %v3479_v5, %v2014_v28 }
 0x742   : > { %v2020_v31 = vsub.f32 %v2018_v30, %v2019_v29 }
 0x744   : > { %v2022_v32 = vadd.f32 1e-05, %v2020_v31 }
 0x746   : > { %2809 = vrsqrt.f32 %v2022_v32 }
 0x753   : > { %v2810_v34 = vpop.eup %2809 }
 0x754   : > { %v2024_v36 = vmul.f32 %v2810_v34, %v2021_v33 }
 0x756   : > { %v2032_v38 = vmul.f32 %v2405_v35, %v2024_v36 }
 0x758   : > { %v2040_v39 = vadd.f32 %v2406_v37, %v2032_v38 }
 0x75a   : > { %2640 = vmatmul.mubr.f32.vlgmr.msra.gmra.mxu1 %v2040_v39 }
 0x81a   : > { %v2130_v53 = vpop.f32.mrf.mxu1 }
 0x81b   : > { %v2131_v17 = vadd.f32 %v2407_v52, %v2130_v53 }
 0x81c   : > { %v2641_v54 = vpop.f32.mrf.mxu1 }
 0x81d   : > { %v2135_v55 = vmul.f32 0.70710677, %v2131_v17  ;;  %v2134_v57 = vmul.f32 0.5, %v2131_v17 }
 0x81f   : > { %2811 = verf.f32 %v2135_v55 }
 0x82c   : > { %v2812_v56 = vpop.eup %2811 }
 0x82d   : > { %v2137_v58 = vadd.f32 1.0, %v2812_v56 }
 0x82f   : > { %v2138_v59 = vmul.f32 %v2137_v58, %v2134_v57 }
 0x831   : > { %2675 = vmatmul.mubr.f32.vlgmr.msra.gmra.mxu0 %v2138_v59 }
 0x8f1   : > { %v2228_v60 = vpop.f32.mrf.mxu0 }
 0x8f2   : > { %v2229_v61 = vadd.f32 %v2408_v0, %v2228_v60 }
 0x8f3   : > { %v2676_v62 = vpop.f32.mrf.mxu0 }
 0x8f4   : > { %v2232_v63 = vadd.f32 %v2229_v61, %v3479_v5 }
 0x8f6   : > { %2233 = vst [vmem:[%s473_s9] sm:$0xff] %v2232_v63 }
 0x8f7   : > { %2958 = shalt.err (!%p2955_p8)
}
 0x8f8   : > { %s2959_s29 = scalar_lea.hbm %s2247_s27, 128  ;;  %s2963_s3 = scalar_lea.hbm %s3605_s15, 256 }
 0x8f9   : > { %p2960_p10 = scmp.ne.s32.totalorder %s2247_s27, %s2959_s29  ;;  %p2964_p13 = scmp.lt.s32.totalorder %s2247_s27, %s3605_s15 }
 0x8fa   : > { %p2965_p2 = scmp.lt.s32.totalorder %s2963_s3, %s2959_s29 }
 0x8fb   : > { %p2961_p12 = pnand %p2960_p10, %p3222_p4 }
 0x8fc   : > { %p2966_p11 = por %p2965_p2, %p2964_p13 }
 0x8fd   : > { %p2962_p6 = pneg %p2961_p12 }
 0x8ff   : > { %p2967_p1 = pnand %p2966_p11, %p2962_p6 }
 0x901   : > { %2970 = shalt.err (!%p2967_p1)
}
 0x902   : > { %2695 = dma.vmem_to_hbm [thread:$0]  (%p3222_p4), %s2250_s24, 128, %s2247_s27, %s2235_s13  }
 0x903 PF: > { %s2261_s4 = sand.u32 1, %s3013_s17   ;;  %p3606_p3 = scmp.ne.s32.totalorder %s3603_s26, 0 }
 0x904   : > { %p3607_p5 = scmp.ge.s32.totalorder %s3033_s22, 2  ;;  %s2262_s9 = scalar_lea.sflag [#allocation4], %s2261_s4 }
 0x906   : > { %p2715_p0 = pnand %p3607_p5, %p3606_p3 }
 0x908   : > { %p2716_p9 = pneg %p2715_p0 }
 0x90a   : > { %3008 = dma.done.wait (%p2716_p9), %s2262_s9, 128  }
 0x90b   : > { %3010 = vsyncadd (%p2716_p9), %s2262_s9, 4294967168  ;;  %s29_s22 = sadd.s32 1, %s3033_s22   ;;  %s3608_s25 = sld [smem:[#allocation18_spill]] }
 0x90c   : > { %p26_p7 = scmp.ge.s32.totalorder %s29_s22, 4   ;;  %s3609_s20 = sld [smem:[#allocation16_spill]] }
 0x90d   : > { %s3610_s21 = sld [smem:[#allocation17_spill]]  ;;  %s3611_s17 = smov %s3017_s18 }
 0x90e   : > { %s3612_s18 = smov %s3021_s19  ;;  %28 = sbr.rel (!%p26_p7) target bundleno = 14 (0xe), region = 125 }
 0x911   : > { %s3613_s19 = smov %s3608_s25 }
 0x913   :  { %2267 = vsyncpa [#allocation3], 1 }
 0x914   :  { %2269 = vsyncpa [#allocation3 + $0x1], 1 }
 0x915   :  { %2270 = vsyncpa [#allocation6], 1 }
 0x916   :  { %2271 = vsyncpa [#allocation9], 1 }
 0x917   :  { %2272 = vsyncpa [#allocation4], 1 }
 0x918   :  { %2274 = vsyncpa [#allocation4 + $0x1], 1 }

</bundles_post_ra>
